<compile_context>
chip_gen: v5e
topology: v5e:2x2
jax: 0.10.0
libtpu: 0.0.40
codegen_flags: <defaults>
</compile_context>

<pallas_src>
import jax
import jax.numpy as jnp
from jax.experimental import pallas as pl
from jax.experimental.pallas import tpu as pltpu


def _sigmoid(x):
    return 1.0 / (1.0 + jnp.exp(-x))


def _global_attention_kernel(xa_ref, xh_ref, xw_ref,
                             wc_ref, whf_ref, wh1_ref, wwf_ref, ww1_ref,
                             wm1_ref, b1_ref, wm2_ref,
                             eh_ref, ew_ref,
                             o_ref):
    # xa_ref : (1, C, H*W)   input, channels-first, spatial flattened on lanes
    # xh_ref : (1, C*H, W)   input viewed for the (len,1) conv contraction
    # xw_ref : (1, C*W, H)   input viewed for the (1,len) conv contraction
    # wc_ref : (C, C)        conv 1x1 weight (out, in)
    # whf_ref: (C, C*H)      hconv weight with conv1x1 folded in
    # wh1_ref: (C, C)        hconv1 1x1 weight
    # wwf_ref: (C, C*W)      wconv weight with conv1x1 folded in
    # ww1_ref: (C, C)        wconv1 1x1 weight
    # wm1_ref: (C, C)        mlp conv1 weight with BN scale folded
    # b1_ref : (C, 1)        folded BN bias
    # wm2_ref: (C, C)        mlp conv2 weight
    # eh_ref : (H, H*W)      constant expansion: eh[h, h*W + w] = 1
    # ew_ref : (W, H*W)      constant expansion: ew[w, h*W + w] = 1
    # o_ref  : (1, C, H*W)
    f32 = jnp.float32
    x_a = xa_ref[0].astype(f32)      # (C, H*W)
    x_h = xh_ref[0].astype(f32)      # (C*H, W)
    x_w = xw_ref[0].astype(f32)      # (C*W, H)

    # x1 = conv1x1(x)  -> (C, H*W), lane-dense
    x1 = jnp.dot(wc_ref[...], x_a, preferred_element_type=f32)

    # height branch: x2 = softmax over channels of hconv1(hconv(conv(x)))  -> (C, W)
    x2 = jnp.dot(whf_ref[...], x_h, preferred_element_type=f32)
    x2 = jnp.dot(wh1_ref[...], x2, preferred_element_type=f32)
    x2 = jnp.exp(x2 - jnp.max(x2, axis=0, keepdims=True))
    x2 = x2 / jnp.sum(x2, axis=0, keepdims=True)

    # width branch: x3 = softmax over channels of wconv1(wconv(conv(x)))   -> (C, H)
    x3 = jnp.dot(wwf_ref[...], x_w, preferred_element_type=f32)
    x3 = jnp.dot(ww1_ref[...], x3, preferred_element_type=f32)
    x3 = jnp.exp(x3 - jnp.max(x3, axis=0, keepdims=True))
    x3 = x3 / jnp.sum(x3, axis=0, keepdims=True)

    # x4[c, h*W+w] = x3[c, h] * x2[c, w]   (torch.matmul outer product), built with
    # constant expansion matmuls so the result is directly (C, H*W) lane-dense.
    x3e = jnp.dot(x3, eh_ref[...], preferred_element_type=f32)   # (C, H*W)
    x2e = jnp.dot(x2, ew_ref[...], preferred_element_type=f32)   # (C, H*W)
    x1g = x1 * _sigmoid(x3e * x2e)

    # mlp: conv1x1 -> BN(eval, folded) -> relu -> conv1x1
    m = jnp.dot(wm1_ref[...], x1g, preferred_element_type=f32) + b1_ref[...]
    m = jnp.maximum(m, 0.0)
    m = jnp.dot(wm2_ref[...], m, preferred_element_type=f32)

    # residual with the ORIGINAL input, then sigmoid
    o_ref[0] = _sigmoid(x_a + m).astype(o_ref.dtype)


def global_attention(x_nchw, fused_params):
    """Fused Global_Attention forward. x_nchw: (N, C, H, W) with H == W == len."""
    wc, whf, wh1, wwf, ww1, wm1s, b1, wm2 = fused_params
    N, C, H, W = x_nchw.shape
    HW = H * W

    # Free / tiny host-side re-arrangements of the 64 KB input (no activation
    # transposes happen after this point).
    xa = x_nchw.reshape(N, C, HW)
    xh = x_nchw.reshape(N, C * H, W)
    xw = jnp.transpose(x_nchw, (0, 1, 3, 2)).reshape(N, C * W, H)

    # Constant 0/1 expansion matrices for the per-channel outer product.
    p = jnp.arange(HW)
    eh = (p[None, :] // W == jnp.arange(H)[:, None]).astype(jnp.float32)   # (H, HW)
    ew = (p[None, :] % W == jnp.arange(W)[:, None]).astype(jnp.float32)    # (W, HW)

    out = pl.pallas_call(
        _global_attention_kernel,
        out_shape=jax.ShapeDtypeStruct((N, C, HW), x_nchw.dtype),
        grid=(N,),
        in_specs=[
            pl.BlockSpec((1, C, HW), lambda n: (n, 0, 0)),
            pl.BlockSpec((1, C * H, W), lambda n: (n, 0, 0)),
            pl.BlockSpec((1, C * W, H), lambda n: (n, 0, 0)),
            pl.BlockSpec((C, C), lambda n: (0, 0)),
            pl.BlockSpec((C, C * H), lambda n: (0, 0)),
            pl.BlockSpec((C, C), lambda n: (0, 0)),
            pl.BlockSpec((C, C * W), lambda n: (0, 0)),
            pl.BlockSpec((C, C), lambda n: (0, 0)),
            pl.BlockSpec((C, C), lambda n: (0, 0)),
            pl.BlockSpec((C, 1), lambda n: (0, 0)),
            pl.BlockSpec((C, C), lambda n: (0, 0)),
            pl.BlockSpec((H, HW), lambda n: (0, 0)),
            pl.BlockSpec((W, HW), lambda n: (0, 0)),
        ],
        out_specs=pl.BlockSpec((1, C, HW), lambda n: (n, 0, 0)),
        compiler_params=pltpu.CompilerParams(dimension_semantics=("parallel",)),
    )(xa, xh, xw, wc, whf, wh1, wwf, ww1, wm1s, b1, wm2, eh, ew)

    return out.reshape(N, C, H, W)


def init_params(key, embed_dim, length, eps=1e-5):
    """Deterministic params matching Global_Attention.__init__ layer shapes.

    Returns (raw, fused): raw weights for the pure-JAX reference, and the
    folded / re-laid-out weights consumed by the Pallas kernel.
    """
    C = embed_dim
    ks = jax.random.split(key, 7)

    def conv_w(k, shape, fan_in):
        bound = 1.0 / (fan_in ** 0.5)
        return jax.random.uniform(k, shape, jnp.float32, -bound, bound)

    wc = conv_w(ks[0], (C, C), C)                      # conv   1x1  (out, in)
    wh = conv_w(ks[1], (C, C, length), C * length)     # hconv  (out, in, kh), kw=1
    wh1 = conv_w(ks[2], (C, C), C)                     # hconv1 1x1
    ww = conv_w(ks[3], (C, C, length), C * length)     # wconv  (out, in, kw), kh=1
    ww1 = conv_w(ks[4], (C, C), C)                     # wconv1 1x1
    wm1 = conv_w(ks[5], (C, C), C)                     # mlp conv 1
    wm2 = conv_w(ks[6], (C, C), C)                     # mlp conv 2

    # BatchNorm2d(C) in eval mode with default stats (weight=1, bias=0, mean=0, var=1)
    gamma = jnp.ones((C,), jnp.float32)
    beta = jnp.zeros((C,), jnp.float32)
    mean = jnp.zeros((C,), jnp.float32)
    var = jnp.ones((C,), jnp.float32)
    scale = gamma / jnp.sqrt(var + eps)
    bias = beta - mean * scale

    raw = (wc, wh, wh1, ww, ww1, wm1, wm2, scale, bias)

    # Fold the leading 1x1 conv into the (len,1)/(1,len) conv weights.
    whf = jnp.einsum('oih,ij->ojh', wh, wc).reshape(C, C * length)   # col = j*H + h
    wwf = jnp.einsum('oiw,ij->ojw', ww, wc).reshape(C, C * length)   # col = j*W + w
    wm1s = wm1 * scale[:, None]                                      # BN scale folded
    fused = (wc, whf, wh1, wwf, ww1, wm1s, bias.reshape(C, 1), wm2)
    return raw, fused


def global_attention_reference(x, raw):
    """Pure-JAX reference of the PyTorch forward (BN in eval mode)."""
    wc, wh, wh1, ww, ww1, wm1, wm2, scale, bias = raw
    hi = jax.lax.Precision.HIGHEST
    x1 = jnp.einsum('oi,nihw->nohw', wc, x, precision=hi)
    x2 = jnp.einsum('oih,nihw->now', wh, x1, precision=hi)
    x2 = jnp.einsum('oi,niw->now', wh1, x2, precision=hi)
    x2 = jax.nn.softmax(x2, axis=1)
    x3 = jnp.einsum('oiw,nihw->noh', ww, x1, precision=hi)
    x3 = jnp.einsum('oi,nih->noh', ww1, x3, precision=hi)
    x3 = jax.nn.softmax(x3, axis=1)
    x4 = jax.nn.sigmoid(x3[:, :, :, None] * x2[:, :, None, :])
    x1 = x1 * x4
    m = jnp.einsum('oi,nihw->nohw', wm1, x1, precision=hi)
    m = m * scale[None, :, None, None] + bias[None, :, None, None]
    m = jax.nn.relu(m)
    m = jnp.einsum('oi,nihw->nohw', wm2, m, precision=hi)
    return jax.nn.sigmoid(x + m)


if __name__ == "__main__":
    key = jax.random.PRNGKey(0)
    k_x, k_p = jax.random.split(key)

    batch, embed_dim, spatial = 2, 32, 16          # len == spatial (required by hconv/wconv)
    x = jax.random.normal(k_x, (batch, embed_dim, spatial, spatial), jnp.float32)  # NCHW

    raw, fused = init_params(k_p, embed_dim, spatial)

    out = jax.block_until_ready(global_attention(x, fused))
    assert out.shape == (batch, embed_dim, spatial, spatial)
    assert bool(jnp.all(jnp.isfinite(out)))

    ref = jax.block_until_ready(global_attention_reference(x, raw))
    max_err = float(jnp.max(jnp.abs(out - ref)))
    assert max_err < 1e-3, f"mismatch vs reference: {max_err}"

    print("KERNEL_OK")
</pallas_src>

<mosaic_0001>
module attributes {stable_mosaic.version = 11 : i64} {
  func.func @_global_attention_kernel(%arg0: i32, %arg1: memref<1x32x256xf32, #tpu.memory_space<vmem>>, %arg2: memref<1x512x16xf32, #tpu.memory_space<vmem>>, %arg3: memref<1x512x16xf32, #tpu.memory_space<vmem>>, %arg4: memref<32x32xf32, #tpu.memory_space<vmem>>, %arg5: memref<32x512xf32, #tpu.memory_space<vmem>>, %arg6: memref<32x32xf32, #tpu.memory_space<vmem>>, %arg7: memref<32x512xf32, #tpu.memory_space<vmem>>, %arg8: memref<32x32xf32, #tpu.memory_space<vmem>>, %arg9: memref<32x32xf32, #tpu.memory_space<vmem>>, %arg10: memref<32x1xf32, #tpu.memory_space<vmem>>, %arg11: memref<32x32xf32, #tpu.memory_space<vmem>>, %arg12: memref<16x256xf32, #tpu.memory_space<vmem>>, %arg13: memref<16x256xf32, #tpu.memory_space<vmem>>, %arg14: memref<1x32x256xf32, #tpu.memory_space<vmem>>) attributes {dimension_semantics = [#tpu.dimension_semantics<parallel>], iteration_bounds = array<i64: 2>, scalar_prefetch = 0 : i64, scratch_operands = 0 : i64, tpu.core_type = #tpu.core_type<tc>, window_params = [{transform_indices = @transform_0, window_bounds = array<i64: 1, 32, 256>}, {transform_indices = @transform_1, window_bounds = array<i64: 1, 512, 16>}, {transform_indices = @transform_2, window_bounds = array<i64: 1, 512, 16>}, {pipeline_mode = #tpu.pipeline_mode<synchronous>, transform_indices = @transform_3, window_bounds = array<i64: 32, 32>}, {pipeline_mode = #tpu.pipeline_mode<synchronous>, transform_indices = @transform_4, window_bounds = array<i64: 32, 512>}, {pipeline_mode = #tpu.pipeline_mode<synchronous>, transform_indices = @transform_5, window_bounds = array<i64: 32, 32>}, {pipeline_mode = #tpu.pipeline_mode<synchronous>, transform_indices = @transform_6, window_bounds = array<i64: 32, 512>}, {pipeline_mode = #tpu.pipeline_mode<synchronous>, transform_indices = @transform_7, window_bounds = array<i64: 32, 32>}, {pipeline_mode = #tpu.pipeline_mode<synchronous>, transform_indices = @transform_8, window_bounds = array<i64: 32, 32>}, {pipeline_mode = #tpu.pipeline_mode<synchronous>, transform_indices = @transform_9, window_bounds = array<i64: 32, 1>}, {pipeline_mode = #tpu.pipeline_mode<synchronous>, transform_indices = @transform_10, window_bounds = array<i64: 32, 32>}, {pipeline_mode = #tpu.pipeline_mode<synchronous>, transform_indices = @transform_11, window_bounds = array<i64: 16, 256>}, {pipeline_mode = #tpu.pipeline_mode<synchronous>, transform_indices = @transform_12, window_bounds = array<i64: 16, 256>}, {transform_indices = @transform_13, window_bounds = array<i64: 1, 32, 256>}]} {
    %c0 = arith.constant 0 : index
    %c0_0 = arith.constant 0 : index
    %c0_1 = arith.constant 0 : index
    %0 = vector.load %arg1[%c0, %c0_0, %c0_1] : memref<1x32x256xf32, #tpu.memory_space<vmem>>, vector<1x32x256xf32>
    %1 = vector.shape_cast %0 : vector<1x32x256xf32> to vector<32x256xf32>
    %c0_2 = arith.constant 0 : index
    %c0_3 = arith.constant 0 : index
    %c0_4 = arith.constant 0 : index
    %2 = vector.load %arg2[%c0_2, %c0_3, %c0_4] : memref<1x512x16xf32, #tpu.memory_space<vmem>>, vector<1x512x16xf32>
    %3 = vector.shape_cast %2 : vector<1x512x16xf32> to vector<512x16xf32>
    %c0_5 = arith.constant 0 : index
    %c0_6 = arith.constant 0 : index
    %c0_7 = arith.constant 0 : index
    %4 = vector.load %arg3[%c0_5, %c0_6, %c0_7] : memref<1x512x16xf32, #tpu.memory_space<vmem>>, vector<1x512x16xf32>
    %5 = vector.shape_cast %4 : vector<1x512x16xf32> to vector<512x16xf32>
    %c0_8 = arith.constant 0 : index
    %c0_9 = arith.constant 0 : index
    %6 = vector.load %arg4[%c0_8, %c0_9] : memref<32x32xf32, #tpu.memory_space<vmem>>, vector<32x32xf32>
    %cst = arith.constant dense<0.000000e+00> : vector<32x256xf32>
    %7 = tpu.matmul %6, %1, %cst {dimension_numbers = #tpu.dot_dimension_numbers<[1], [0], [0], [1], [0, 0, 1, 1], [], []>} : vector<32x32xf32>, vector<32x256xf32>, vector<32x256xf32> -> vector<32x256xf32>
    %c0_10 = arith.constant 0 : index
    %c0_11 = arith.constant 0 : index
    %8 = vector.load %arg5[%c0_10, %c0_11] : memref<32x512xf32, #tpu.memory_space<vmem>>, vector<32x512xf32>
    %cst_12 = arith.constant dense<0.000000e+00> : vector<32x16xf32>
    %9 = tpu.matmul %8, %3, %cst_12 {dimension_numbers = #tpu.dot_dimension_numbers<[1], [0], [0], [1], [0, 0, 1, 1], [], []>} : vector<32x512xf32>, vector<512x16xf32>, vector<32x16xf32> -> vector<32x16xf32>
    %c0_13 = arith.constant 0 : index
    %c0_14 = arith.constant 0 : index
    %10 = vector.load %arg6[%c0_13, %c0_14] : memref<32x32xf32, #tpu.memory_space<vmem>>, vector<32x32xf32>
    %cst_15 = arith.constant dense<0.000000e+00> : vector<32x16xf32>
    %11 = tpu.matmul %10, %9, %cst_15 {dimension_numbers = #tpu.dot_dimension_numbers<[1], [0], [0], [1], [0, 0, 1, 1], [], []>} : vector<32x32xf32>, vector<32x16xf32>, vector<32x16xf32> -> vector<32x16xf32>
    %cst_16 = arith.constant dense<0xFF800000> : vector<16xf32>
    %12 = vector.multi_reduction <maximumf>, %11, %cst_16 [0] : vector<32x16xf32> to vector<16xf32>
    %13 = vector.shape_cast %12 : vector<16xf32> to vector<1x16xf32>
    %14 = vector.broadcast %13 : vector<1x16xf32> to vector<32x16xf32>
    %15 = arith.subf %11, %14 : vector<32x16xf32>
    %16 = math.exp %15 : vector<32x16xf32>
    %cst_17 = arith.constant dense<0.000000e+00> : vector<16xf32>
    %17 = vector.multi_reduction <add>, %16, %cst_17 [0] : vector<32x16xf32> to vector<16xf32>
    %18 = vector.shape_cast %17 : vector<16xf32> to vector<1x16xf32>
    %19 = vector.broadcast %18 : vector<1x16xf32> to vector<32x16xf32>
    %20 = arith.divf %16, %19 : vector<32x16xf32>
    %c0_18 = arith.constant 0 : index
    %c0_19 = arith.constant 0 : index
    %21 = vector.load %arg7[%c0_18, %c0_19] : memref<32x512xf32, #tpu.memory_space<vmem>>, vector<32x512xf32>
    %cst_20 = arith.constant dense<0.000000e+00> : vector<32x16xf32>
    %22 = tpu.matmul %21, %5, %cst_20 {dimension_numbers = #tpu.dot_dimension_numbers<[1], [0], [0], [1], [0, 0, 1, 1], [], []>} : vector<32x512xf32>, vector<512x16xf32>, vector<32x16xf32> -> vector<32x16xf32>
    %c0_21 = arith.constant 0 : index
    %c0_22 = arith.constant 0 : index
    %23 = vector.load %arg8[%c0_21, %c0_22] : memref<32x32xf32, #tpu.memory_space<vmem>>, vector<32x32xf32>
    %cst_23 = arith.constant dense<0.000000e+00> : vector<32x16xf32>
    %24 = tpu.matmul %23, %22, %cst_23 {dimension_numbers = #tpu.dot_dimension_numbers<[1], [0], [0], [1], [0, 0, 1, 1], [], []>} : vector<32x32xf32>, vector<32x16xf32>, vector<32x16xf32> -> vector<32x16xf32>
    %cst_24 = arith.constant dense<0xFF800000> : vector<16xf32>
    %25 = vector.multi_reduction <maximumf>, %24, %cst_24 [0] : vector<32x16xf32> to vector<16xf32>
    %26 = vector.shape_cast %25 : vector<16xf32> to vector<1x16xf32>
    %27 = vector.broadcast %26 : vector<1x16xf32> to vector<32x16xf32>
    %28 = arith.subf %24, %27 : vector<32x16xf32>
    %29 = math.exp %28 : vector<32x16xf32>
    %cst_25 = arith.constant dense<0.000000e+00> : vector<16xf32>
    %30 = vector.multi_reduction <add>, %29, %cst_25 [0] : vector<32x16xf32> to vector<16xf32>
    %31 = vector.shape_cast %30 : vector<16xf32> to vector<1x16xf32>
    %32 = vector.broadcast %31 : vector<1x16xf32> to vector<32x16xf32>
    %33 = arith.divf %29, %32 : vector<32x16xf32>
    %c0_26 = arith.constant 0 : index
    %c0_27 = arith.constant 0 : index
    %34 = vector.load %arg12[%c0_26, %c0_27] : memref<16x256xf32, #tpu.memory_space<vmem>>, vector<16x256xf32>
    %cst_28 = arith.constant dense<0.000000e+00> : vector<32x256xf32>
    %35 = tpu.matmul %33, %34, %cst_28 {dimension_numbers = #tpu.dot_dimension_numbers<[1], [0], [0], [1], [0, 0, 1, 1], [], []>} : vector<32x16xf32>, vector<16x256xf32>, vector<32x256xf32> -> vector<32x256xf32>
    %c0_29 = arith.constant 0 : index
    %c0_30 = arith.constant 0 : index
    %36 = vector.load %arg13[%c0_29, %c0_30] : memref<16x256xf32, #tpu.memory_space<vmem>>, vector<16x256xf32>
    %cst_31 = arith.constant dense<0.000000e+00> : vector<32x256xf32>
    %37 = tpu.matmul %20, %36, %cst_31 {dimension_numbers = #tpu.dot_dimension_numbers<[1], [0], [0], [1], [0, 0, 1, 1], [], []>} : vector<32x16xf32>, vector<16x256xf32>, vector<32x256xf32> -> vector<32x256xf32>
    %38 = arith.mulf %35, %37 : vector<32x256xf32>
    %cst_32 = arith.constant 0.000000e+00 : f32
    %39 = vector.broadcast %cst_32 : f32 to vector<32x256xf32>
    %40 = arith.subf %39, %38 : vector<32x256xf32>
    %41 = math.exp %40 : vector<32x256xf32>
    %cst_33 = arith.constant 1.000000e+00 : f32
    %42 = vector.broadcast %cst_33 : f32 to vector<32x256xf32>
    %43 = arith.addf %42, %41 : vector<32x256xf32>
    %cst_34 = arith.constant 1.000000e+00 : f32
    %44 = vector.broadcast %cst_34 : f32 to vector<32x256xf32>
    %45 = arith.divf %44, %43 : vector<32x256xf32>
    %46 = arith.mulf %7, %45 : vector<32x256xf32>
    %c0_35 = arith.constant 0 : index
    %c0_36 = arith.constant 0 : index
    %47 = vector.load %arg9[%c0_35, %c0_36] : memref<32x32xf32, #tpu.memory_space<vmem>>, vector<32x32xf32>
    %cst_37 = arith.constant dense<0.000000e+00> : vector<32x256xf32>
    %48 = tpu.matmul %47, %46, %cst_37 {dimension_numbers = #tpu.dot_dimension_numbers<[1], [0], [0], [1], [0, 0, 1, 1], [], []>} : vector<32x32xf32>, vector<32x256xf32>, vector<32x256xf32> -> vector<32x256xf32>
    %c0_38 = arith.constant 0 : index
    %c0_39 = arith.constant 0 : index
    %49 = vector.load %arg10[%c0_38, %c0_39] : memref<32x1xf32, #tpu.memory_space<vmem>>, vector<32x1xf32>
    %50 = vector.broadcast %49 : vector<32x1xf32> to vector<32x256xf32>
    %51 = arith.addf %48, %50 : vector<32x256xf32>
    %cst_40 = arith.constant 0.000000e+00 : f32
    %52 = vector.broadcast %cst_40 : f32 to vector<32x256xf32>
    %53 = arith.maximumf %51, %52 : vector<32x256xf32>
    %c0_41 = arith.constant 0 : index
    %c0_42 = arith.constant 0 : index
    %54 = vector.load %arg11[%c0_41, %c0_42] : memref<32x32xf32, #tpu.memory_space<vmem>>, vector<32x32xf32>
    %cst_43 = arith.constant dense<0.000000e+00> : vector<32x256xf32>
    %55 = tpu.matmul %54, %53, %cst_43 {dimension_numbers = #tpu.dot_dimension_numbers<[1], [0], [0], [1], [0, 0, 1, 1], [], []>} : vector<32x32xf32>, vector<32x256xf32>, vector<32x256xf32> -> vector<32x256xf32>
    %56 = arith.addf %1, %55 : vector<32x256xf32>
    %cst_44 = arith.constant 0.000000e+00 : f32
    %57 = vector.broadcast %cst_44 : f32 to vector<32x256xf32>
    %58 = arith.subf %57, %56 : vector<32x256xf32>
    %59 = math.exp %58 : vector<32x256xf32>
    %cst_45 = arith.constant 1.000000e+00 : f32
    %60 = vector.broadcast %cst_45 : f32 to vector<32x256xf32>
    %61 = arith.addf %60, %59 : vector<32x256xf32>
    %cst_46 = arith.constant 1.000000e+00 : f32
    %62 = vector.broadcast %cst_46 : f32 to vector<32x256xf32>
    %63 = arith.divf %62, %61 : vector<32x256xf32>
    %c0_47 = arith.constant 0 : index
    %c0_48 = arith.constant 0 : index
    %c0_49 = arith.constant 0 : index
    %64 = vector.load %arg14[%c0_47, %c0_48, %c0_49] : memref<1x32x256xf32, #tpu.memory_space<vmem>>, vector<1x32x256xf32>
    %65 = vector.shape_cast %64 : vector<1x32x256xf32> to vector<32x256xf32>
    %66 = vector.shape_cast %63 : vector<32x256xf32> to vector<1x32x256xf32>
    tpu.vector_store %arg14[%c0_47, %c0_48, %c0_49], %66 {strides = array<i32>} : memref<1x32x256xf32, #tpu.memory_space<vmem>>, vector<1x32x256xf32>,
    return
  }
  func.func @transform_0(%arg0: i32) -> (i32, i32, i32) {
    %c0_i32 = arith.constant 0 : i32
    %c0_i32_0 = arith.constant 0 : i32
    %c0_i32_1 = arith.constant 0 : i32
    return %arg0, %c0_i32, %c0_i32_0 : i32, i32, i32
  }
  func.func @transform_1(%arg0: i32) -> (i32, i32, i32) {
    %c0_i32 = arith.constant 0 : i32
    %c0_i32_0 = arith.constant 0 : i32
    %c0_i32_1 = arith.constant 0 : i32
    return %arg0, %c0_i32, %c0_i32_0 : i32, i32, i32
  }
  func.func @transform_2(%arg0: i32) -> (i32, i32, i32) {
    %c0_i32 = arith.constant 0 : i32
    %c0_i32_0 = arith.constant 0 : i32
    %c0_i32_1 = arith.constant 0 : i32
    return %arg0, %c0_i32, %c0_i32_0 : i32, i32, i32
  }
  func.func @transform_3(%arg0: i32) -> (i32, i32) {
    %c0_i32 = arith.constant 0 : i32
    %c0_i32_0 = arith.constant 0 : i32
    %c0_i32_1 = arith.constant 0 : i32
    return %c0_i32, %c0_i32_0 : i32, i32
  }
  func.func @transform_4(%arg0: i32) -> (i32, i32) {
    %c0_i32 = arith.constant 0 : i32
    %c0_i32_0 = arith.constant 0 : i32
    %c0_i32_1 = arith.constant 0 : i32
    return %c0_i32, %c0_i32_0 : i32, i32
  }
  func.func @transform_5(%arg0: i32) -> (i32, i32) {
    %c0_i32 = arith.constant 0 : i32
    %c0_i32_0 = arith.constant 0 : i32
    %c0_i32_1 = arith.constant 0 : i32
    return %c0_i32, %c0_i32_0 : i32, i32
  }
  func.func @transform_6(%arg0: i32) -> (i32, i32) {
    %c0_i32 = arith.constant 0 : i32
    %c0_i32_0 = arith.constant 0 : i32
    %c0_i32_1 = arith.constant 0 : i32
    return %c0_i32, %c0_i32_0 : i32, i32
  }
  func.func @transform_7(%arg0: i32) -> (i32, i32) {
    %c0_i32 = arith.constant 0 : i32
    %c0_i32_0 = arith.constant 0 : i32
    %c0_i32_1 = arith.constant 0 : i32
    return %c0_i32, %c0_i32_0 : i32, i32
  }
  func.func @transform_8(%arg0: i32) -> (i32, i32) {
    %c0_i32 = arith.constant 0 : i32
    %c0_i32_0 = arith.constant 0 : i32
    %c0_i32_1 = arith.constant 0 : i32
    return %c0_i32, %c0_i32_0 : i32, i32
  }
  func.func @transform_9(%arg0: i32) -> (i32, i32) {
    %c0_i32 = arith.constant 0 : i32
    %c0_i32_0 = arith.constant 0 : i32
    %c0_i32_1 = arith.constant 0 : i32
    return %c0_i32, %c0_i32_0 : i32, i32
  }
  func.func @transform_10(%arg0: i32) -> (i32, i32) {
    %c0_i32 = arith.constant 0 : i32
    %c0_i32_0 = arith.constant 0 : i32
    %c0_i32_1 = arith.constant 0 : i32
    return %c0_i32, %c0_i32_0 : i32, i32
  }
  func.func @transform_11(%arg0: i32) -> (i32, i32) {
    %c0_i32 = arith.constant 0 : i32
    %c0_i32_0 = arith.constant 0 : i32
    %c0_i32_1 = arith.constant 0 : i32
    return %c0_i32, %c0_i32_0 : i32, i32
  }
  func.func @transform_12(%arg0: i32) -> (i32, i32) {
    %c0_i32 = arith.constant 0 : i32
    %c0_i32_0 = arith.constant 0 : i32
    %c0_i32_1 = arith.constant 0 : i32
    return %c0_i32, %c0_i32_0 : i32, i32
  }
  func.func @transform_13(%arg0: i32) -> (i32, i32, i32) {
    %c0_i32 = arith.constant 0 : i32
    %c0_i32_0 = arith.constant 0 : i32
    %c0_i32_1 = arith.constant 0 : i32
    return %arg0, %c0_i32, %c0_i32_0 : i32, i32, i32
  }
}

</mosaic_0001>

<bundles_post_ra>
// kernel: tpu_custom_call.1
= control target key start
LH: loop header
LB: loop body
LE: loop exit
PB: predicated region body
PF: predicated region fallthrough
CT: control target
= control target key end

     0   :  { %s3146_s0 = inlined_call_operand.vmem [shape: f32[2,32,256], index: 0, kind: input, shape index: {}]   ;;  %s3147_s1 = inlined_call_operand.vmem [shape: f32[2,512,16], index: 1, kind: input, shape index: {}]   ;;  %s3148_s2 = inlined_call_operand.vmem [shape: f32[2,512,16], index: 2, kind: input, shape index: {}]   ;;  %s3149_s3 = inlined_call_operand.vmem [shape: f32[32,32], index: 3, kind: input, shape index: {}]   ;;  %s3150_s4 = inlined_call_operand.vmem [shape: f32[32,512], index: 4, kind: input, shape index: {}]   ;;  %s3151_s5 = inlined_call_operand.vmem [shape: f32[32,32], index: 5, kind: input, shape index: {}]   ;;  %s3152_s6 = inlined_call_operand.vmem [shape: f32[32,512], index: 6, kind: input, shape index: {}]   ;;  %s3153_s7 = inlined_call_operand.vmem [shape: f32[32,32], index: 7, kind: input, shape index: {}]   ;;  %s3154_s8 = inlined_call_operand.vmem [shape: f32[32,32], index: 8, kind: input, shape index: {}]   ;;  %s3155_s9 = inlined_call_operand.vmem [shape: f32[32,1], index: 9, kind: input, shape index: {}]   ;;  %s3156_s10 = inlined_call_operand.vmem [shape: f32[32,32], index: 10, kind: input, shape index: {}]   ;;  %s3157_s11 = inlined_call_operand.vmem [shape: f32[16,256], index: 11, kind: input, shape index: {}]   ;;  %s3158_s12 = inlined_call_operand.vmem [shape: f32[16,256], index: 12, kind: input, shape index: {}]   ;;  %s3159_s13 = inlined_call_operand.hbm [shape: f32[2,32,256], index: 13, kind: output, shape index: {}]  }
   0x1   :  { %3162 = sst [smem:[#allocation6_spill]] %s3146_s0 }
   0x2   :  { %3163 = sst [smem:[#allocation7_spill]] %s3147_s1 }
   0x3   :  { %3164 = sst [smem:[#allocation8_spill]] %s3149_s3 }
   0x4   :  { %18 = vsyncpa [#allocation3], 0 }
   0x5   :  { %20 = vsyncpa [#allocation3 + $0x1], 0  ;;  %s2284_s25 = smov 0   ;;  %s2286_s26 = smov 0  }
   0x6   :  { %s2288_s27 = smov 0   ;;  %s2290_s28 = smov 0  }
   0x7 LB: > { %s2305_s29 = sadd.s32 4294967295, %s2209_s28   ;;  %s1923_s30 = sadd.s32 4294967294, %s2209_s28   ;;  %s2209_s28 = sphi %s2290_s28, %s3217_s28   ;;  %s2205_s27 = sphi %s2288_s27, %s3216_s27   ;;  %s2201_s26 = sphi %s2286_s26, %s3215_s26   ;;  %s2197_s25 = sphi %s2284_s25, %s3214_s25  }
   0x8   : > { %s2309_s14 = sadd.s32 1, %s2209_s28   ;;  %s321_s15 = sadd.s32 1, %s2205_s27 }
   0x9   : > { %s318_s16 = ssub.s32 %s2209_s28, %s2309_s14  ;;  %p331_p0 = scmp.ne.s32.totalorder %s2205_s27, %s2201_s26 }
   0xa   : > { %p319_p1 = scmp.eq.s32.totalorder %s318_s16, 0  ;;  %p332_p2 = scmp.eq.s32.totalorder %s2305_s29, 1 }
   0xb   : > { %p337_p3 = scmp.ne.s32.totalorder %s2201_s26, %s2197_s25  ;;  %p338_p4 = scmp.eq.s32.totalorder %s1923_s30, 1 }
   0xc   : > { %s2320_s17 = scalar_select %p319_p1, %s2205_s27, %s321_s15  }
   0xd   : > { %p2322_p5 = por %p332_p2, %p331_p0  ;;  %p2326_p6 = por %p338_p4, %p337_p3 }
   0xe   : > { %3165 = sst [smem:[#allocation5_spill]] %s2320_s17  ;;  %p1926_p7 = scmp.ge.s32.totalorder %s2209_s28, 1 }
   0xf   : > { %p410_p8 = scmp.lt.s32.totalorder %s2209_s28, 3 }
  0x11   : > { %p411_p9 = pnand %p1926_p7, %p410_p8 }
  0x12   : > { %p464_p10 = scmp.lt.s32.totalorder (!%p411_p9), %s2305_s29, 1  ;;  %s3168_s0 = sld [smem:[#allocation6_spill]] (!%p411_p9) }
  0x13   : > { %414 = sbr.rel (%p411_p9) target bundleno = 1187 (0x4a3), region = 72  ;;  %s3169_s1 = sld [smem:[#allocation7_spill]] (!%p411_p9) }
  0x14   : > { %s3170_s3 = sld [smem:[#allocation8_spill]] (!%p411_p9) }
  0x18   : > { %s2334_s20 = scalar_select %p464_p10, %s2305_s29, 1  ;;  %vm3161_vm0 = vcmask 261120   ;;  %vm867_vm1 = vcmask 130048  }
  0x1a   : > { %s1987_s21 = sshll.u32 %s2334_s20, 6  ;;  %s3160_s22 = sshll.u32 %s2334_s20, 9  ;;  %v615_v15 = vld [vmem:[%s3170_s3] sm:$0xff]  ;;  %v616_v32 = vld [vmem:[%s3170_s3 + $0x8] sm:$0xff]  ;;  %v617_v49 = vld [vmem:[%s3170_s3 + $0x10] sm:$0xff] }
  0x1b   : > { %s2341_s30 = scalar_lea.vmem %s3168_s0, %s1987_s21  ;;  %s2348_s17 = scalar_lea.vmem %s3169_s1, %s3160_s22 }
  0x1c   : > { %v485_v0 = vld [vmem:[%s2341_s30 + $0x30] sm:$0xff]  ;;  %v502_v1 = vld [vmem:[%s2348_s17 + $0x78] sm:$0xff]  ;;  %v483_v3 = vld [vmem:[%s2341_s30 + $0x20] sm:$0xff]  ;;  %s3171_s23 = sshll.u32 %s2334_s20, 9  ;;  %s461_s20 = sand.u32 1, %s2201_s26  }
  0x1d   : > { %v518_v2 = vld [vmem:[%s2348_s17 + $0xf8] sm:$0xff]  ;;  %644 = vmatpush.msra.mxu0 %v485_v0  ;;  %706 = vmatpush.msra.mxu2 %v502_v1  ;;  %v501_v5 = vld [vmem:[%s2348_s17 + $0x70] sm:$0xff]  ;;  %v484_v8 = vld [vmem:[%s2341_s30 + $0x28] sm:$0xff]  ;;  %s3071_s16 = sshll.u32 %s461_s20, 6  ;;  %s1990_s21 = sshll.u32 %s2305_s29, 6 }
  0x1e   : > { %v486_v4 = vld [vmem:[%s2341_s30 + $0x38] sm:$0xff]  ;;  %735 = vmatpush.msra.mxu3 %v518_v2  ;;  %v517_v6 = vld [vmem:[%s2348_s17 + $0xf0] sm:$0xff]  ;;  %v500_v9 = vld [vmem:[%s2348_s17 + $0x68] sm:$0xff]  ;;  %s1833_s22 = scalar_lea.hbm %s3159_s13, %s1990_s21  ;;  %s2167_s21 = scalar_lea.hbm %s3159_s13, 128 }
  0x1f   : > { %673 = vmatpush.msra.mxu1 %v486_v4  ;;  %v481_v7 = vld [vmem:[%s2341_s30 + $0x10] sm:$0xff]  ;;  %645 = vmatpush.msra.mxu0 %v483_v3  ;;  %v516_v10 = vld [vmem:[%s2348_s17 + $0xe8] sm:$0xff]  ;;  %v479_v11 = vld [vmem:[%s2341_s30] sm:$0xff] }
  0x20   : > { %707 = vmatpush.msra.mxu2 %v501_v5  ;;  %736 = vmatpush.msra.mxu3 %v517_v6  ;;  %v482_v12 = vld [vmem:[%s2341_s30 + $0x18] sm:$0xff]  ;;  %v499_v13 = vld [vmem:[%s2348_s17 + $0x60] sm:$0xff]  ;;  %v480_v16 = vld [vmem:[%s2341_s30 + $0x8] sm:$0xff] }
  0x21   : > { %674 = vmatpush.msra.mxu1 %v484_v8  ;;  %646 = vmatpush.msra.mxu0 %v481_v7  ;;  %v515_v14 = vld [vmem:[%s2348_s17 + $0xe0] sm:$0xff]  ;;  %v498_v17 = vld [vmem:[%s2348_s17 + $0x58] sm:$0xff]  ;;  %v497_v20 = vld [vmem:[%s2348_s17 + $0x50] sm:$0xff] }
  0x22   : > { %708 = vmatpush.msra.mxu2 %v500_v9  ;;  %737 = vmatpush.msra.mxu3 %v516_v10  ;;  %v514_v18 = vld [vmem:[%s2348_s17 + $0xd8] sm:$0xff]  ;;  %v513_v21 = vld [vmem:[%s2348_s17 + $0xd0] sm:$0xff]  ;;  %v496_v24 = vld [vmem:[%s2348_s17 + $0x48] sm:$0xff] }
  0x23   : > { %675 = vmatpush.msra.mxu1 %v482_v12  ;;  %647 = vmatpush.msra.mxu0 %v479_v11  ;;  %v534_v19 = vld [vmem:[%s2348_s17 + $0x178] sm:$0xff]  ;;  %v533_v22 = vld [vmem:[%s2348_s17 + $0x170] sm:$0xff]  ;;  %v512_v25 = vld [vmem:[%s2348_s17 + $0xc8] sm:$0xff] }
  0x24   : > { %709 = vmatpush.msra.mxu2 %v499_v13  ;;  %738 = vmatpush.msra.mxu3 %v515_v14  ;;  %v550_v23 = vld [vmem:[%s2348_s17 + $0x1f8] sm:$0xff]  ;;  %v532_v26 = vld [vmem:[%s2348_s17 + $0x168] sm:$0xff]  ;;  %v549_v27 = vld [vmem:[%s2348_s17 + $0x1f0] sm:$0xff] }
  0x25   : > { %1934 = vmatmul.msk.f32.vlgmr.msra.gmra.mxu0 %vm3161_vm0, %v615_v15  ;;  %676 = vmatpush.msra.mxu1 %v480_v16  ;;  %v495_v28 = vld [vmem:[%s2348_s17 + $0x40] sm:$0xff]  ;;  %v548_v31 = vld [vmem:[%s2348_s17 + $0x1e8] sm:$0xff]  ;;  %v494_v33 = vld [vmem:[%s2348_s17 + $0x38] sm:$0xff] }
  0x26   : > { %710 = vmatpush.msra.mxu2 %v498_v17  ;;  %739 = vmatpush.msra.mxu3 %v514_v18  ;;  %v511_v29 = vld [vmem:[%s2348_s17 + $0xc0] sm:$0xff]  ;;  %v510_v34 = vld [vmem:[%s2348_s17 + $0xb8] sm:$0xff]  ;;  %v493_v37 = vld [vmem:[%s2348_s17 + $0x30] sm:$0xff] }
  0x27   : > { %764 = vmatpush.msrb.mxu0 %v534_v19  ;;  %1938 = vmatmul.msk.f32.vlgmr.msra.gmra.mxu1 %vm3161_vm0, %v615_v15  ;;  %v531_v30 = vld [vmem:[%s2348_s17 + $0x160] sm:$0xff]  ;;  %v530_v35 = vld [vmem:[%s2348_s17 + $0x158] sm:$0xff]  ;;  %v509_v38 = vld [vmem:[%s2348_s17 + $0xb0] sm:$0xff] }
  0x28   : > { %711 = vmatpush.msra.mxu2 %v497_v20  ;;  %740 = vmatpush.msra.mxu3 %v513_v21  ;;  %v547_v36 = vld [vmem:[%s2348_s17 + $0x1e0] sm:$0xff]  ;;  %v529_v39 = vld [vmem:[%s2348_s17 + $0x150] sm:$0xff]  ;;  %v546_v40 = vld [vmem:[%s2348_s17 + $0x1d8] sm:$0xff] }
  0x29   : > { %765 = vmatpush.msrb.mxu0 %v533_v22  ;;  %793 = vmatpush.msrb.mxu1 %v550_v23  ;;  %v492_v41 = vld [vmem:[%s2348_s17 + $0x28] sm:$0xff]  ;;  %v545_v44 = vld [vmem:[%s2348_s17 + $0x1d0] sm:$0xff]  ;;  %v491_v45 = vld [vmem:[%s2348_s17 + $0x20] sm:$0xff] }
  0x2a   : > { %712 = vmatpush.msra.mxu2 %v496_v24  ;;  %741 = vmatpush.msra.mxu3 %v512_v25  ;;  %v508_v42 = vld [vmem:[%s2348_s17 + $0xa8] sm:$0xff]  ;;  %v507_v46 = vld [vmem:[%s2348_s17 + $0xa0] sm:$0xff]  ;;  %v490_v50 = vld [vmem:[%s2348_s17 + $0x18] sm:$0xff] }
  0x2b   : > { %766 = vmatpush.msrb.mxu0 %v532_v26  ;;  %794 = vmatpush.msrb.mxu1 %v549_v27  ;;  %v528_v43 = vld [vmem:[%s2348_s17 + $0x148] sm:$0xff]  ;;  %v527_v47 = vld [vmem:[%s2348_s17 + $0x140] sm:$0xff]  ;;  %v506_v51 = vld [vmem:[%s2348_s17 + $0x98] sm:$0xff] }
  0x2c   : > { %713 = vmatpush.msra.mxu2 %v495_v28  ;;  %742 = vmatpush.msra.mxu3 %v511_v29  ;;  %v544_v48 = vld [vmem:[%s2348_s17 + $0x1c8] sm:$0xff]  ;;  %v526_v52 = vld [vmem:[%s2348_s17 + $0x138] sm:$0xff]  ;;  %v543_v53 = vld [vmem:[%s2348_s17 + $0x1c0] sm:$0xff] }
  0x2d   : > { %767 = vmatpush.msrb.mxu0 %v531_v30  ;;  %795 = vmatpush.msrb.mxu1 %v548_v31  ;;  %v489_v54 = vld [vmem:[%s2348_s17 + $0x10] sm:$0xff]  ;;  %v542_v57 = vld [vmem:[%s2348_s17 + $0x1b8] sm:$0xff]  ;;  %v488_v58 = vld [vmem:[%s2348_s17 + $0x8] sm:$0xff] }
  0x2e   : > { %1935 = vmatmul.msk.f32.gmra.mxu0 %vm3161_vm0, %v616_v32  ;;  %714 = vmatpush.msra.mxu2 %v494_v33  ;;  %v505_v55 = vld [vmem:[%s2348_s17 + $0x90] sm:$0xff]  ;;  %v504_v59 = vld [vmem:[%s2348_s17 + $0x88] sm:$0xff]  ;;  %v487_v62 = vld [vmem:[%s2348_s17] sm:$0xff] }
  0x2f   : > { %743 = vmatpush.msra.mxu3 %v510_v34  ;;  %768 = vmatpush.msrb.mxu0 %v530_v35  ;;  %v525_v56 = vld [vmem:[%s2348_s17 + $0x130] sm:$0xff]  ;;  %v524_v60 = vld [vmem:[%s2348_s17 + $0x128] sm:$0xff]  ;;  %v503_v63 = vld [vmem:[%s2348_s17 + $0x80] sm:$0xff] }
  0x30   : > { %796 = vmatpush.msrb.mxu1 %v547_v36  ;;  %715 = vmatpush.msra.mxu2 %v493_v37  ;;  %v541_v61 = vld [vmem:[%s2348_s17 + $0x1b0] sm:$0xff]  ;;  %v523_v0 = vld [vmem:[%s2348_s17 + $0x120] sm:$0xff]  ;;  %v540_v1 = vld [vmem:[%s2348_s17 + $0x1a8] sm:$0xff] }
  0x31   : > { %1939 = vmatmul.msk.f32.gmra.mxu1 %vm3161_vm0, %v616_v32  ;;  %744 = vmatpush.msra.mxu3 %v509_v38  ;;  %v618_v2 = vld [vmem:[%s3170_s3 + $0x18] sm:$0xff]  ;;  %v690_v3 = vld [vmem:[%s3150_s4] sm:$0xff]  ;;  %v691_v4 = vld [vmem:[%s3150_s4 + $0x8] sm:$0xff] }
  0x32   : > { %769 = vmatpush.msrb.mxu0 %v529_v39  ;;  %797 = vmatpush.msrb.mxu1 %v546_v40  ;;  %v522_v5 = vld [vmem:[%s2348_s17 + $0x118] sm:$0xff]  ;;  %v539_v6 = vld [vmem:[%s2348_s17 + $0x1a0] sm:$0xff]  ;;  %v521_v7 = vld [vmem:[%s2348_s17 + $0x110] sm:$0xff] }
  0x33   : > { %716 = vmatpush.msra.mxu2 %v492_v41  ;;  %745 = vmatpush.msra.mxu3 %v508_v42  ;;  %v538_v8 = vld [vmem:[%s2348_s17 + $0x198] sm:$0xff]  ;;  %v520_v9 = vld [vmem:[%s2348_s17 + $0x108] sm:$0xff]  ;;  %v537_v10 = vld [vmem:[%s2348_s17 + $0x190] sm:$0xff] }
  0x34   : > { %770 = vmatpush.msrb.mxu0 %v528_v43  ;;  %798 = vmatpush.msrb.mxu1 %v545_v44  ;;  %v519_v11 = vld [vmem:[%s2348_s17 + $0x100] sm:$0xff]  ;;  %v536_v12 = vld [vmem:[%s2348_s17 + $0x188] sm:$0xff]  ;;  %v692_v15 = vld [vmem:[%s3150_s4 + $0x10] sm:$0xff] }
  0x35   : > { %717 = vmatpush.msra.mxu2 %v491_v45  ;;  %746 = vmatpush.msra.mxu3 %v507_v46  ;;  %v694_v13 = vld [vmem:[%s3150_s4 + $0x20] sm:$0xff]  ;;  %v695_v14 = vld [vmem:[%s3150_s4 + $0x28] sm:$0xff]  ;;  %v693_v17 = vld [vmem:[%s3150_s4 + $0x18] sm:$0xff] }
  0x36   : > { %771 = vmatpush.msrb.mxu0 %v527_v47  ;;  %799 = vmatpush.msrb.mxu1 %v544_v48  ;;  %v535_v16 = vld [vmem:[%s2348_s17 + $0x180] sm:$0xff]  ;;  %v699_v19 = vld [vmem:[%s3150_s4 + $0x48] sm:$0xff]  ;;  %v696_v20 = vld [vmem:[%s3150_s4 + $0x30] sm:$0xff]  ;;  %s2499_s17 = scalar_lea.vmem %s3148_s2, %s3171_s23  ;;  %s1836_s23 = sshll.u32 %s1833_s22, 4  ;;  %s1837_s23 = int_to_ptr.hbm [resolvable:$true] %s1836_s23 }
  0x37   : > { %1936 = vmatmul.msk.f32.gmra.mxu0 %vm3161_vm0, %v617_v49  ;;  %718 = vmatpush.msra.mxu2 %v490_v50  ;;  %v698_v18 = vld [vmem:[%s3150_s4 + $0x40] sm:$0xff]  ;;  %v697_v21 = vld [vmem:[%s3150_s4 + $0x38] sm:$0xff]  ;;  %v703_v23 = vld [vmem:[%s3150_s4 + $0x68] sm:$0xff]  ;;  %s2161_s24 = sshra.s32 %s1837_s23, 4  ;;  %s2162_s24 = int_to_ptr.hbm [resolvable:$true] %s2161_s24 }
  0x38   : > { %747 = vmatpush.msra.mxu3 %v506_v51  ;;  %772 = vmatpush.msrb.mxu0 %v526_v52  ;;  %v702_v22 = vld [vmem:[%s3150_s4 + $0x60] sm:$0xff]  ;;  %v700_v24 = vld [vmem:[%s3150_s4 + $0x50] sm:$0xff]  ;;  %v701_v25 = vld [vmem:[%s3150_s4 + $0x58] sm:$0xff]  ;;  %s2163_s15 = scalar_lea.hbm %s2162_s24, 64  ;;  %p2168_p0 = scmp.lt.s32.totalorder %s2162_s24, %s3159_s13 }
  0x39   : > { %800 = vmatpush.msrb.mxu1 %v543_v53  ;;  %719 = vmatpush.msra.mxu2 %v489_v54  ;;  %v704_v26 = vld [vmem:[%s3150_s4 + $0x70] sm:$0xff]  ;;  %v705_v27 = vld [vmem:[%s3150_s4 + $0x78] sm:$0xff]  ;;  %v580_v33 = vld [vmem:[%s2499_s17 + $0xe8] sm:$0xff]  ;;  %p2164_p11 = scmp.ne.s32.totalorder %s2162_s24, %s2163_s15  ;;  %p2169_p1 = scmp.lt.s32.totalorder %s2167_s21, %s2163_s15 }
  0x3a   : > { %1940 = vmatmul.msk.f32.gmra.mxu1 %vm3161_vm0, %v617_v49  ;;  %748 = vmatpush.msra.mxu3 %v505_v55  ;;  %v582_v30 = vld [vmem:[%s2499_s17 + $0xf8] sm:$0xff]  ;;  %v581_v31 = vld [vmem:[%s2499_s17 + $0xf0] sm:$0xff]  ;;  %v579_v35 = vld [vmem:[%s2499_s17 + $0xe0] sm:$0xff] }
  0x3b   : > { %773 = vmatpush.msrb.mxu0 %v525_v56  ;;  %801 = vmatpush.msrb.mxu1 %v542_v57  ;;  %v578_v36 = vld [vmem:[%s2499_s17 + $0xd8] sm:$0xff]  ;;  %v577_v37 = vld [vmem:[%s2499_s17 + $0xd0] sm:$0xff]  ;;  %v576_v39 = vld [vmem:[%s2499_s17 + $0xc8] sm:$0xff]  ;;  %p2165_p12 = pnand %p2164_p11, %p2322_p5  ;;  %p2170_p2 = por %p2169_p1, %p2168_p0 }
  0x3c   : > { %720 = vmatpush.msra.mxu2 %v488_v58  ;;  %749 = vmatpush.msra.mxu3 %v504_v59  ;;  %v575_v41 = vld [vmem:[%s2499_s17 + $0xc0] sm:$0xff]  ;;  %v574_v42 = vld [vmem:[%s2499_s17 + $0xb8] sm:$0xff]  ;;  %v573_v43 = vld [vmem:[%s2499_s17 + $0xb0] sm:$0xff] }
  0x3d   : > { %774 = vmatpush.msrb.mxu0 %v524_v60  ;;  %802 = vmatpush.msrb.mxu1 %v541_v61  ;;  %v572_v45 = vld [vmem:[%s2499_s17 + $0xa8] sm:$0xff]  ;;  %v566_v46 = vld [vmem:[%s2499_s17 + $0x78] sm:$0xff]  ;;  %v571_v47 = vld [vmem:[%s2499_s17 + $0xa0] sm:$0xff]  ;;  %p2166_p13 = pneg %p2165_p12 }
  0x3e   : > { %721 = vmatpush.msra.mxu2 %v487_v62  ;;  %750 = vmatpush.msra.mxu3 %v503_v63  ;;  %v565_v49 = vld [vmem:[%s2499_s17 + $0x70] sm:$0xff]  ;;  %v570_v50 = vld [vmem:[%s2499_s17 + $0x98] sm:$0xff]  ;;  %v564_v51 = vld [vmem:[%s2499_s17 + $0x68] sm:$0xff] }
  0x3f   : > { %775 = vmatpush.msrb.mxu0 %v523_v0  ;;  %803 = vmatpush.msrb.mxu1 %v540_v1  ;;  %v569_v52 = vld [vmem:[%s2499_s17 + $0x90] sm:$0xff]  ;;  %v563_v55 = vld [vmem:[%s2499_s17 + $0x60] sm:$0xff]  ;;  %v568_v56 = vld [vmem:[%s2499_s17 + $0x88] sm:$0xff]  ;;  %p2171_p3 = pnand %p2170_p2, %p2166_p13 }
  0x40   : > { %1937 = vmatmul.msk.f32.gmra.mxu0 %vm3161_vm0, %v618_v2  ;;  %722 = vmatmul.f32.vlgmr.msra.gmra.mxu2 %v690_v3  ;;  %v562_v58 = vld [vmem:[%s2499_s17 + $0x58] sm:$0xff]  ;;  %v567_v59 = vld [vmem:[%s2499_s17 + $0x80] sm:$0xff]  ;;  %v925_v62 = vld [vmem:[%s3152_s6 + $0x8] sm:$0xff] }
  0x41   : > { %751 = vmatmul.f32.vlgmr.msra.gmra.mxu3 %v691_v4  ;;  %776 = vmatpush.msrb.mxu0 %v522_v5  ;;  %v598_v60 = vld [vmem:[%s2499_s17 + $0x178] sm:$0xff]  ;;  %v561_v63 = vld [vmem:[%s2499_s17 + $0x50] sm:$0xff]  ;;  %v596_v3 = vld [vmem:[%s2499_s17 + $0x168] sm:$0xff] }
  0x42   : > { %804 = vmatpush.msrb.mxu1 %v539_v6  ;;  %940 = vmatpush.msrb.mxu3 %v566_v46  ;;  %v597_v0 = vld [vmem:[%s2499_s17 + $0x170] sm:$0xff]  ;;  %v2549_v1 = vld [vmem:[%s2499_s17 + $0x1f8] sm:$0xff] }
  0x43   : > { %1941 = vmatmul.msk.f32.gmra.mxu1 %vm3161_vm0, %v618_v2  ;;  %777 = vmatpush.msrb.mxu0 %v521_v7  ;;  %v560_v2 = vld [vmem:[%s2499_s17 + $0x48] sm:$0xff]  ;;  %v2555_v4 = vld [vmem:[%s2499_s17 + $0x1f0] sm:$0xff]  ;;  %v559_v7 = vld [vmem:[%s2499_s17 + $0x40] sm:$0xff] }
  0x44   : > { %805 = vmatpush.msrb.mxu1 %v538_v8  ;;  %941 = vmatpush.msrb.mxu3 %v565_v49  ;;  %v595_v8 = vld [vmem:[%s2499_s17 + $0x160] sm:$0xff] }
  0x45   : > { %778 = vmatpush.msrb.mxu0 %v520_v9  ;;  %v2565_v9 = vld [vmem:[%s2499_s17 + $0x1e8] sm:$0xff] }
  0x46   : > { %806 = vmatpush.msrb.mxu1 %v537_v10  ;;  %942 = vmatpush.msrb.mxu3 %v564_v51  ;;  %v558_v10 = vld [vmem:[%s2499_s17 + $0x38] sm:$0xff]  ;;  %v587_v51 = vld [vmem:[%s2499_s17 + $0x120] sm:$0xff] }
  0x47   : > { %779 = vmatpush.msrb.mxu0 %v519_v11  ;;  %v594_v11 = vld [vmem:[%s2499_s17 + $0x158] sm:$0xff] }
  0x48   : > { %807 = vmatpush.msrb.mxu1 %v536_v12  ;;  %725 = vmatmul.f32.gmra.mxu2 %v694_v13  ;;  %v2573_v13 = vld [vmem:[%s2499_s17 + $0x1e0] sm:$0xff] }
  0x49   : > { %754 = vmatmul.f32.gmra.mxu3 %v695_v14  ;;  %780 = vmatmul.f32.vlgmr.msrb.gmra.mxu0 %v692_v15  ;;  %v929_v15 = vld [vmem:[%s3152_s6 + $0x28] sm:$0xff] }
  0x4a   : > { %808 = vmatpush.msrb.mxu1 %v535_v16  ;;  %969 = vmatpush.msra.mxu0 %v582_v30  ;;  %v557_v16 = vld [vmem:[%s2499_s17 + $0x30] sm:$0xff]  ;;  %v590_v30 = vld [vmem:[%s2499_s17 + $0x138] sm:$0xff] }
  0x4b   : > { %809 = vmatmul.f32.vlgmr.msrb.gmra.mxu1 %v693_v17  ;;  %943 = vmatpush.msrb.mxu3 %v563_v55  ;;  %v593_v17 = vld [vmem:[%s2499_s17 + $0x150] sm:$0xff]  ;;  %v2623_v55 = vld [vmem:[%s2499_s17 + $0x1a8] sm:$0xff] }
  0x4c   : > { %970 = vmatpush.msra.mxu0 %v581_v31  ;;  %998 = vmatpush.msra.mxu1 %v598_v60 }
  0x4d   : > { %944 = vmatpush.msrb.mxu3 %v562_v58  ;;  %v924_v58 = vld [vmem:[%s3152_s6] sm:$0xff] }
  0x4e   : > { %971 = vmatpush.msra.mxu0 %v580_v33  ;;  %999 = vmatpush.msra.mxu1 %v597_v0  ;;  %v2602_v33 = vld [vmem:[%s2499_s17 + $0x1c0] sm:$0xff] }
  0x4f   : > { %945 = vmatpush.msrb.mxu3 %v561_v63 }
  0x50   : > { %728 = vmatmul.f32.gmra.mxu2 %v698_v18  ;;  %972 = vmatpush.msra.mxu0 %v579_v35  ;;  %v2584_v18 = vld [vmem:[%s2499_s17 + $0x1d8] sm:$0xff] }
  0x51   : > { %757 = vmatmul.f32.gmra.mxu3 %v699_v19  ;;  %783 = vmatmul.f32.gmra.mxu0 %v696_v20  ;;  %v556_v19 = vld [vmem:[%s2499_s17 + $0x28] sm:$0xff] }
  0x52   : > { %973 = vmatpush.msra.mxu0 %v578_v36  ;;  %946 = vmatpush.msrb.mxu3 %v560_v2  ;;  %v592_v20 = vld [vmem:[%s2499_s17 + $0x148] sm:$0xff] }
  0x53   : > { %812 = vmatmul.f32.gmra.mxu1 %v697_v21  ;;  %v2590_v21 = vld [vmem:[%s2499_s17 + $0x1d0] sm:$0xff]  ;;  %v933_v36 = vld [vmem:[%s3152_s6 + $0x48] sm:$0xff] }
  0x54   : > { %974 = vmatpush.msra.mxu0 %v577_v37  ;;  %1000 = vmatpush.msra.mxu1 %v596_v3  ;;  %v553_v37 = vld [vmem:[%s2499_s17 + $0x10] sm:$0xff] }
  0x55   : > { %947 = vmatpush.msrb.mxu3 %v559_v7  ;;  %v602_v7 = vld [vmem:[%s2499_s17 + $0x198] sm:$0xff] }
  0x56   : > { %975 = vmatpush.msra.mxu0 %v576_v39  ;;  %1001 = vmatpush.msra.mxu1 %v595_v8  ;;  %v589_v39 = vld [vmem:[%s2499_s17 + $0x130] sm:$0xff] }
  0x57   : > { %948 = vmatpush.msrb.mxu3 %v558_v10 }
  0x58   : > { %731 = vmatmul.f32.gmra.mxu2 %v702_v22  ;;  %976 = vmatpush.msra.mxu0 %v575_v41  ;;  %v2611_v41 = vld [vmem:[%s2499_s17 + $0x1b8] sm:$0xff] }
  0x59   : > { %760 = vmatmul.f32.gmra.mxu3 %v703_v23  ;;  %786 = vmatmul.f32.gmra.mxu0 %v700_v24  ;;  %v555_v24 = vld [vmem:[%s2499_s17 + $0x20] sm:$0xff] }
  0x5a   : > { %977 = vmatpush.msra.mxu0 %v574_v42  ;;  %1002 = vmatpush.msra.mxu1 %v594_v11  ;;  %v552_v42 = vld [vmem:[%s2499_s17 + $0x8] sm:$0xff] }
  0x5b   : > { %815 = vmatmul.f32.gmra.mxu1 %v701_v25  ;;  %949 = vmatpush.msrb.mxu3 %v557_v16  ;;  %v591_v25 = vld [vmem:[%s2499_s17 + $0x140] sm:$0xff] }
  0x5c   : > { %978 = vmatpush.msra.mxu0 %v573_v43  ;;  %1003 = vmatpush.msra.mxu1 %v593_v17  ;;  %v588_v43 = vld [vmem:[%s2499_s17 + $0x128] sm:$0xff]  ;;  %v583_v16 = vld [vmem:[%s2499_s17 + $0x100] sm:$0xff] }
  0x5d   : > { %950 = vmatpush.msrb.mxu3 %v556_v19  ;;  %v600_v17 = vld [vmem:[%s2499_s17 + $0x188] sm:$0xff] }
  0x5e   : > { %979 = vmatpush.msra.mxu0 %v572_v45  ;;  %1004 = vmatpush.msra.mxu1 %v592_v20  ;;  %v2617_v45 = vld [vmem:[%s2499_s17 + $0x1b0] sm:$0xff] }
  0x5f   : > { %951 = vmatpush.msrb.mxu3 %v555_v24  ;;  %v926_v20 = vld [vmem:[%s3152_s6 + $0x10] sm:$0xff] }
  0x60   : > { %980 = vmatpush.msra.mxu0 %v571_v47  ;;  %1005 = vmatpush.msra.mxu1 %v591_v25  ;;  %v930_v24 = vld [vmem:[%s3152_s6 + $0x30] sm:$0xff]  ;;  %v823_v25 = vld [vmem:[%s3151_s5 + $0x8] sm:$0xff] }
  0x61   : > { %789 = vmatmul.f32.gmra.mxu0 %v704_v26  ;;  %v2596_v26 = vld [vmem:[%s2499_s17 + $0x1c8] sm:$0xff] }
  0x62   : > { %981 = vmatpush.msra.mxu0 %v570_v50  ;;  %1006 = vmatpush.msra.mxu1 %v590_v30  ;;  %v551_v50 = vld [vmem:[%s2499_s17] sm:$0xff] }
  0x63   : > { %818 = vmatmul.f32.gmra.mxu1 %v705_v27  ;;  %v554_v27 = vld [vmem:[%s2499_s17 + $0x18] sm:$0xff] }
  0x64   : > { %982 = vmatpush.msra.mxu0 %v569_v52  ;;  %952 = vmatpush.msrb.mxu3 %v554_v27  ;;  %v939_v27 = vld [vmem:[%s3152_s6 + $0x78] sm:$0xff] }
  0x65   : > { %1007 = vmatpush.msra.mxu1 %v589_v39 }
  0x66   : > { %983 = vmatpush.msra.mxu0 %v568_v56  ;;  %953 = vmatpush.msrb.mxu3 %v553_v37 }
  0x67   : > { %1008 = vmatpush.msra.mxu1 %v588_v43 }
  0x68   : > { %984 = vmatpush.msra.mxu0 %v567_v59  ;;  %954 = vmatpush.msrb.mxu3 %v552_v42  ;;  %v586_v59 = vld [vmem:[%s2499_s17 + $0x118] sm:$0xff] }
  0x69   : > { %985 = vmatmul.f32.vlgmr.msra.gmra.mxu0 %v925_v62  ;;  %1009 = vmatpush.msra.mxu1 %v587_v51  ;;  %v2633_v62 = vld [vmem:[%s2499_s17 + $0x1a0] sm:$0xff] }
  0x6a   : > { %1027 = vmatpush.msrb.mxu0 %v2549_v1  ;;  %955 = vmatpush.msrb.mxu3 %v551_v50 }
  0x6b   : > { %956 = vmatmul.f32.vlgmr.msrb.gmra.mxu3 %v924_v58  ;;  %1010 = vmatpush.msra.mxu1 %v586_v59 }
  0x6c   : > { %1028 = vmatpush.msrb.mxu0 %v2555_v4 }
  0x6e   : > { %1029 = vmatpush.msrb.mxu0 %v2565_v9 }
  0x70   : > { %1030 = vmatpush.msrb.mxu0 %v2573_v13 }
  0x71   : > { %988 = vmatmul.f32.gmra.mxu0 %v929_v15 }
  0x72   : > { %1031 = vmatpush.msrb.mxu0 %v2584_v18 }
  0x74   : > { %1032 = vmatpush.msrb.mxu0 %v2590_v21 }
  0x76   : > { %1033 = vmatpush.msrb.mxu0 %v2596_v26 }
  0x78   : > { %1034 = vmatpush.msrb.mxu0 %v2602_v33 }
  0x79   : > { %991 = vmatmul.f32.gmra.mxu0 %v933_v36 }
  0x7a   : > { %1035 = vmatpush.msrb.mxu0 %v2611_v41 }
  0x7c   : > { %1036 = vmatpush.msrb.mxu0 %v2617_v45 }
  0x7e   : > { %1037 = vmatpush.msrb.mxu0 %v2623_v55 }
  0x80   : > { %1038 = vmatpush.msrb.mxu0 %v2633_v62 }
  0x82   : > { %1039 = vmatpush.msrb.mxu0 %v602_v7 }
  0xa2   : > { %v2490_v28 = vpop.f32.mrf.mxu0 }
  0xa4   : > { %v2492_v29 = vpop.f32.mrf.mxu1 }
  0xab   : > { %v2503_v32 = vpop.f32.mrf.mxu0 }
  0xae   : > { %v2506_v34 = vpop.f32.mrf.mxu1 }
  0xb4   : > { %v2511_v38 = vpop.f32.mrf.mxu0 }
  0xb7   : > { %v2514_v40 = vpop.f32.mrf.mxu1 }
  0xbd   : > { %v2519_v44 = vpop.f32.mrf.mxu0 }
  0xc0   : > { %v2524_v48 = vpop.f32.mrf.mxu1 }
  0xc3   : > { %v2530_v53 = vpop.f32.mrf.mxu2 }
  0xc4   : > { %v2532_v54 = vpop.f32.mrf.mxu3 }
  0xc5   : > { %v753_v63 = vadd.f32 %v2532_v54, %v2530_v53  ;;  %v584_v53 = vld [vmem:[%s2499_s17 + $0x108] sm:$0xff]  ;;  %v601_v54 = vld [vmem:[%s2499_s17 + $0x190] sm:$0xff] }
  0xc6   : > { %v2536_v57 = vpop.f32.mrf.mxu0  ;;  %1040 = vmatpush.msrb.mxu0 %v601_v54 }
  0xc7   : > { %v782_v11 = vadd.f32 %v2536_v57, %v753_v63  ;;  %v599_v57 = vld [vmem:[%s2499_s17 + $0x180] sm:$0xff] }
  0xc8   : > { %v2541_v61 = vpop.f32.mrf.mxu1  ;;  %1041 = vmatpush.msrb.mxu0 %v600_v17 }
  0xca   : > { %1042 = vmatpush.msrb.mxu0 %v599_v57 }
  0xcb   : > { %v2557_v5 = vpop.f32.mrf.mxu2 }
  0xcc   : > { %v2559_v6 = vpop.f32.mrf.mxu3 }
  0xcd   : > { %v756_v56 = vadd.f32 %v2559_v6, %v2557_v5  ;;  %v937_v5 = vld [vmem:[%s3152_s6 + $0x68] sm:$0xff]  ;;  %v585_v6 = vld [vmem:[%s2499_s17 + $0x110] sm:$0xff]  ;;  %s1822_s17 = scalar_lea.sflag [#allocation3], %s461_s20 }
  0xce   : > { %v2570_v12 = vpop.f32.mrf.mxu0  ;;  %994 = vmatmul.f32.gmra.mxu0 %v937_v5  ;;  %1011 = vmatpush.msra.mxu1 %v585_v6 }
  0xcf   : > { %v785_v8 = vadd.f32 %v2570_v12, %v756_v56  ;;  %v928_v12 = vld [vmem:[%s3152_s6 + $0x20] sm:$0xff] }
  0xd0   : > { %v2575_v14 = vpop.f32.mrf.mxu1  ;;  %1012 = vmatpush.msra.mxu1 %v584_v53  ;;  %959 = vmatmul.f32.gmra.mxu3 %v928_v12 }
  0xd1   : > { %v814_v19 = vadd.f32 %v2575_v14, %v785_v8  ;;  %v822_v14 = vld [vmem:[%s3151_s5] sm:$0xff] }
  0xd2   : > { %1013 = vmatpush.msra.mxu1 %v583_v16  ;;  %v1233_v16 = vld [vmem:[%s3158_s12 + $0x10] sm:$0xff] }
  0xd3   : > { %v729_v22 = vpop.f32.mrf.mxu2  ;;  %1014 = vmatmul.f32.vlgmr.msra.gmra.mxu1 %v926_v20 }
  0xd4   : > { %v758_v23 = vpop.f32.mrf.mxu3 }
  0xd5   : > { %v759_v46 = vadd.f32 %v758_v23, %v729_v22  ;;  %v811_v22 = vadd.f32 %v2541_v61, %v782_v11  ;;  %v927_v23 = vld [vmem:[%s3152_s6 + $0x18] sm:$0xff]  ;;  %v932_v61 = vld [vmem:[%s3152_s6 + $0x40] sm:$0xff] }
  0xd6   : > { %v787_v31 = vpop.f32.mrf.mxu0  ;;  %1043 = vmatmul.f32.vlgmr.msrb.gmra.mxu0 %v927_v23 }
  0xd7   : > { %v788_v0 = vadd.f32 %v787_v31, %v759_v46 }
  0xd8   : > { %v816_v35 = vpop.f32.mrf.mxu1  ;;  %962 = vmatmul.f32.gmra.mxu3 %v932_v61 }
  0xd9   : > { %v817_v15 = vadd.f32 %v816_v35, %v788_v0 }
  0xdb   : > { %v732_v47 = vpop.f32.mrf.mxu2  ;;  %1017 = vmatmul.f32.gmra.mxu1 %v930_v24 }
  0xdc   : > { %v761_v49 = vpop.f32.mrf.mxu3 }
  0xdd   : > { %v762_v52 = vadd.f32 %v761_v49, %v732_v47 }
  0xde   : > { %v790_v60 = vpop.f32.mrf.mxu0 }
  0xdf   : > { %v791_v2 = vadd.f32 %v790_v60, %v762_v52 }
  0xe0   : > { %v819_v3 = vpop.f32.mrf.mxu1 }
  0xe1   : > { %v820_v10 = vadd.f32 %v819_v3, %v791_v2 }
  0xe3   : > { %850 = vmatpush.msrb.mxu2 %v820_v10 }
  0xe5   : > { %851 = vmatpush.msrb.mxu2 %v817_v15 }
  0xe6   : > { %v986_v35 = vpop.f32.mrf.mxu0 }
  0xe7   : > { %852 = vmatpush.msrb.mxu2 %v814_v19 }
  0xe9   : > { %853 = vmatpush.msrb.mxu2 %v811_v22 }
  0xea   : > { %1942 = vmatmul.msk.f32.vlgmr.msrb.gmra.mxu2 %vm3161_vm0, %v822_v14 }
  0xeb   : > { %1991 = vmatpush.msra.mxu2 %v2549_v1  ;;  %v936_v1 = vld [vmem:[%s3152_s6 + $0x60] sm:$0xff] }
  0xec   : > { %965 = vmatmul.f32.gmra.mxu3 %v936_v1 }
  0xed   : > { %1992 = vmatpush.msra.mxu2 %v2555_v4  ;;  %v934_v4 = vld [vmem:[%s3152_s6 + $0x50] sm:$0xff] }
  0xee   : > { %1020 = vmatmul.f32.gmra.mxu1 %v934_v4 }
  0xef   : > { %1993 = vmatpush.msra.mxu2 %v2565_v9  ;;  %v824_v9 = vld [vmem:[%s3151_s5 + $0x10] sm:$0xff] }
  0xf1   : > { %1994 = vmatpush.msra.mxu2 %v2573_v13  ;;  %v938_v13 = vld [vmem:[%s3152_s6 + $0x70] sm:$0xff] }
  0xf2   : > { %1943 = vmatmul.msk.f32.gmra.mxu2 %vm3161_vm0, %v823_v25 }
  0xf3   : > { %1995 = vmatpush.msra.mxu2 %v2584_v18  ;;  %v825_v18 = vld [vmem:[%s3151_s5 + $0x18] sm:$0xff] }
  0xf5   : > { %1996 = vmatpush.msra.mxu2 %v2590_v21  ;;  %v931_v21 = vld [vmem:[%s3152_s6 + $0x38] sm:$0xff] }
  0xf6   : > { %1023 = vmatmul.f32.gmra.mxu1 %v938_v13 }
  0xf7   : > { %1997 = vmatpush.msra.mxu2 %v2596_v26  ;;  %v935_v26 = vld [vmem:[%s3152_s6 + $0x58] sm:$0xff] }
  0xf9   : > { %1998 = vmatpush.msra.mxu2 %v2602_v33  ;;  %v957_v33 = vpop.f32.mrf.mxu3 }
  0xfa   : > { %1944 = vmatmul.msk.f32.gmra.mxu2 %vm3161_vm0, %v824_v9  ;;  %v987_v61 = vadd.f32 %v986_v35, %v957_v33 }
  0xfb   : > { %1999 = vmatpush.msra.mxu2 %v2611_v41  ;;  %v989_v41 = vpop.f32.mrf.mxu0 }
  0xfd   : > { %2000 = vmatpush.msra.mxu2 %v2617_v45 }
  0xff   : > { %2001 = vmatpush.msra.mxu2 %v2623_v55 }
 0x101   : > { %2002 = vmatpush.msra.mxu2 %v2633_v62 }
 0x102   : > { %1945 = vmatmul.msk.f32.gmra.mxu2 %vm3161_vm0, %v825_v18 }
 0x103   : > { %2003 = vmatpush.msra.mxu2 %v602_v7  ;;  %v992_v56 = vpop.f32.mrf.mxu0 }
 0x105   : > { %2004 = vmatpush.msra.mxu2 %v601_v54 }
 0x107   : > { %2005 = vmatpush.msra.mxu2 %v600_v17  ;;  %v1231_v17 = vld [vmem:[%s3158_s12] sm:$0xff] }
 0x109   : > { %2006 = vmatpush.msra.mxu2 %v599_v57 }
 0x10a   : > { %1046 = vmatmul.f32.vlgmr.msra.gmra.mxu2 %v931_v21 }
 0x10b   : > { %1261 = vmatpush.msrb.mxu2 %v1233_v16 }
 0x10d   : > { %1262 = vmatpush.msrb.mxu2 %v1231_v17 }
 0x112   : > { %1049 = vmatmul.f32.gmra.mxu2 %v935_v26 }
 0x11a   : > { %1052 = vmatmul.f32.gmra.mxu2 %v939_v27 }
 0x14b   : > { %v995_v5 = vpop.f32.mrf.mxu0 }
 0x150   : > { %v1015_v36 = vpop.f32.mrf.mxu1 }
 0x151   : > { %v1016_v9 = vadd.f32 %v1015_v36, %v987_v61  ;;  %v1057_v36 = vld [vmem:[%s3153_s7 + $0x8] sm:$0xff] }
 0x153   : > { %v960_v39 = vpop.f32.mrf.mxu3  ;;  %v1044_v21 = vpop.f32.mrf.mxu0 }
 0x154   : > { %v990_v14 = vadd.f32 %v989_v41, %v960_v39  ;;  %v1045_v39 = vadd.f32 %v1044_v21, %v1016_v9  ;;  %v1056_v41 = vld [vmem:[%s3153_s7] sm:$0xff]  ;;  %v1159_v21 = vld [vmem:[%s3157_s11 + $0x10] sm:$0xff] }
 0x155   : > { %1187 = vmatpush.msra.mxu0 %v1159_v21 }
 0x158   : > { %v1018_v42 = vpop.f32.mrf.mxu1 }
 0x159   : > { %v1019_v1 = vadd.f32 %v1018_v42, %v990_v14 }
 0x15b   : > { %v963_v55 = vpop.f32.mrf.mxu3 }
 0x15c   : > { %v993_v19 = vadd.f32 %v992_v56, %v963_v55 }
 0x16b   : > { %v1021_v62 = vpop.f32.mrf.mxu1 }
 0x16c   : > { %v1022_v24 = vadd.f32 %v1021_v62, %v993_v19 }
 0x16d   : > { %v855_v30 = vpop.f32.mrf.mxu2 }
 0x16e   : > { %v868_v46 = vsel %vm867_vm1, %v855_v30, -inf }
 0x16f   : > { %v966_v3 = vpop.f32.mrf.mxu3 }
 0x170   : > { %v996_v8 = vadd.f32 %v995_v5, %v966_v3 }
 0x173   : > { %v1024_v15 = vpop.f32.mrf.mxu1 }
 0x174   : > { %v1025_v23 = vadd.f32 %v1024_v15, %v996_v8 }
 0x175   : > { %v858_v31 = vpop.f32.mrf.mxu2 }
 0x176   : > { %v869_v43 = vsel %vm867_vm1, %v858_v31, -inf }
 0x177   : > { %v872_v50 = vmax.f32 %v868_v46, %v869_v43  ;;  %v1234_v43 = vld [vmem:[%s3158_s12 + $0x18] sm:$0xff] }
 0x17d   : > { %v861_v37 = vpop.f32.mrf.mxu2 }
 0x17e   : > { %v870_v47 = vsel %vm867_vm1, %v861_v37, -inf }
 0x185   : > { %v864_v45 = vpop.f32.mrf.mxu2 }
 0x186   : > { %v871_v49 = vsel %vm867_vm1, %v864_v45, -inf }
 0x187   : > { %v873_v51 = vmax.f32 %v870_v47, %v871_v49  ;;  %v1232_v47 = vld [vmem:[%s3158_s12 + $0x8] sm:$0xff] }
 0x189   : > { %v874_v52 = vmax.f32 %v872_v50, %v873_v51 }
 0x18b   : > { %v875_v58 = vrot.slane %v874_v52, 4 }
 0x18d   : > { %v876_v59 = vmax.f32 %v874_v52, %v875_v58  ;;  %v1047_v60 = vpop.f32.mrf.mxu2  ;;  %v1058_v52 = vld [vmem:[%s3153_s7 + $0x10] sm:$0xff] }
 0x18f   : > { %v877_v63 = vrot.slane %v876_v59, 2 }
 0x191   : > { %v878_v0 = vmax.f32 %v876_v59, %v877_v63 }
 0x193   : > { %v879_v2 = vrot.slane %v878_v0, 1 }
 0x195   : > { %v880_v6 = vmax.f32 %v878_v0, %v879_v2  ;;  %v1050_v7 = vpop.f32.mrf.mxu2 }
 0x196   : > { %v1051_v13 = vadd.f32 %v1050_v7, %v1022_v24 }
 0x197   : > { %v881_v10 = vsub.f32 %v855_v30, %v880_v6  ;;  %v882_v53 = vsub.f32 %v858_v31, %v880_v6  ;;  %v883_v54 = vsub.f32 %v861_v37, %v880_v6  ;;  %v884_v11 = vsub.f32 %v864_v45, %v880_v6 }
 0x198   : > { %v1048_v30 = vadd.f32 %v1047_v60, %v1019_v1  ;;  %v1059_v60 = vld [vmem:[%s3153_s7 + $0x18] sm:$0xff] }
 0x199   : > { %v885_v12 = vmul.f32 1.442695, %v881_v10  ;;  %v887_v20 = vmul.f32 1.442695, %v882_v53  ;;  %v889_v57 = vmul.f32 1.442695, %v883_v54 }
 0x19a   : > { %v891_v22 = vmul.f32 1.442695, %v884_v11 }
 0x19b   : > { %2055 = vpow2.f32 %v885_v12 }
 0x19c   : > { %2057 = vpow2.f32 %v887_v20 }
 0x19d   : > { %2059 = vpow2.f32 %v889_v57  ;;  %v1053_v25 = vpop.f32.mrf.mxu2 }
 0x19e   : > { %2061 = vpow2.f32 %v891_v22  ;;  %v1054_v4 = vadd.f32 %v1053_v25, %v1025_v23 }
 0x1a0   : > { %1084 = vmatpush.msrb.mxu1 %v1054_v4  ;;  %2007 = vmatpush.msra.mxu3 %v1054_v4 }
 0x1a1   : > { %v2056_v18 = vpop.eup %2055 }
 0x1a2   : > { %v2058_v26 = vpop.eup %2057  ;;  %v893_v27 = vsel %vm867_vm1, %v2056_v18, 0.0  ;;  %1085 = vmatpush.msrb.mxu1 %v1051_v13  ;;  %2008 = vmatpush.msra.mxu3 %v1051_v13 }
 0x1a3   : > { %v2060_v31 = vpop.eup %2059  ;;  %v894_v33 = vsel %vm867_vm1, %v2058_v26, 0.0 }
 0x1a4   : > { %v2062_v35 = vpop.eup %2061  ;;  %v895_v37 = vadd.f32 %v894_v33, %v893_v27  ;;  %1086 = vmatpush.msrb.mxu1 %v1048_v30  ;;  %2009 = vmatpush.msra.mxu3 %v1048_v30  ;;  %v896_v42 = vsel %vm867_vm1, %v2060_v31, 0.0  ;;  %v1157_v27 = vld [vmem:[%s3157_s11] sm:$0xff] }
 0x1a5   : > { %v898_v46 = vsel %vm867_vm1, %v2062_v35, 0.0  ;;  %1188 = vmatpush.msra.mxu0 %v1157_v27 }
 0x1a6   : > { %v897_v45 = vadd.f32 %v896_v42, %v895_v37  ;;  %1087 = vmatpush.msrb.mxu1 %v1045_v39  ;;  %2010 = vmatpush.msra.mxu3 %v1045_v39  ;;  %v1158_v37 = vld [vmem:[%s3157_s11 + $0x8] sm:$0xff] }
 0x1a7   : > { %1947 = vmatmul.msk.f32.vlgmr.msra.gmra.mxu3 %vm3161_vm0, %v1057_v36  ;;  %1946 = vmatmul.msk.f32.vlgmr.msrb.gmra.mxu1 %vm3161_vm0, %v1056_v41 }
 0x1a8   : > { %v899_v49 = vadd.f32 %v898_v46, %v897_v45  ;;  %1290 = vmatpush.msrb.mxu3 %v1234_v43 }
 0x1aa   : > { %v900_v50 = vrot.slane %v899_v49, 4  ;;  %1291 = vmatpush.msrb.mxu3 %v1232_v47 }
 0x1ac   : > { %v901_v51 = vadd.f32 %v900_v50, %v899_v49 }
 0x1ae   : > { %v902_v55 = vrot.slane %v901_v51, 2 }
 0x1af   : > { %1948 = vmatmul.msk.f32.gmra.mxu3 %vm3161_vm0, %v1058_v52 }
 0x1b0   : > { %v903_v56 = vadd.f32 %v902_v55, %v901_v51 }
 0x1b2   : > { %v904_v58 = vrot.slane %v903_v56, 1 }
 0x1b4   : > { %v905_v59 = vadd.f32 %v904_v58, %v903_v56 }
 0x1b6   : > { %2063 = vrcp.f32 %v905_v59  ;;  %v917_v2 = vand.u32 2147483648, %v905_v59  ;;  %v915_v5 = vand.u32 2147483647, %v905_v59  ;;  %vm911_vm3 = vweird.f32 %v905_v59 }
 0x1b7   : > { %1949 = vmatmul.msk.f32.gmra.mxu3 %vm3161_vm0, %v1059_v60 }
 0x1b8   : > { %v918_v7 = vor.u32 1.1754944e-38, %v917_v2  ;;  %vm916_vm5 = vcmp.eq.f32.partialorder %v915_v5, 8.507059e+37 }
 0x1bc   : > { %v2064_v62 = vpop.eup %2063 }
 0x1bd   : > { %v907_v63 = vmul.f32 %v2064_v62, %v905_v59  ;;  %vm912_vm2 = vweird.f32 %v2064_v62 }
 0x1be   : > { %vm913_vm4 = vmor %vm911_vm3, %vm912_vm2 }
 0x1bf   : > { %v908_v0 = vsub.f32 1.0, %v907_v63 }
 0x1c1   : > { %v909_v3 = vmul.f32 %v2064_v62, %v908_v0 }
 0x1c3   : > { %v910_v6 = vadd.f32 %v2064_v62, %v909_v3 }
 0x1c5   : > { %v914_v8 = vsel %vm913_vm4, %v2064_v62, %v910_v6 }
 0x1c6   : > { %v919_v10 = vsel %vm916_vm5, %v918_v7, %v914_v8 }
 0x1c7   : > { %v920_v53 = vmul.f32 %v2056_v18, %v919_v10  ;;  %v921_v54 = vmul.f32 %v2058_v26, %v919_v10  ;;  %v922_v11 = vmul.f32 %v2060_v31, %v919_v10  ;;  %v923_v15 = vmul.f32 %v2062_v35, %v919_v10  ;;  %v1160_v26 = vld [vmem:[%s3157_s11 + $0x18] sm:$0xff] }
 0x1c8   : > { %1216 = vmatpush.msra.mxu1 %v1160_v26 }
 0x1c9   : > { %1958 = vmatmul.msk.f32.vlgmr.msrb.gmra.mxu2 %vm867_vm1, %v920_v53  ;;  %1962 = vmatmul.msk.f32.vlgmr.msrb.gmra.mxu3 %vm867_vm1, %v920_v53 }
 0x1ca   : > { %1217 = vmatpush.msra.mxu1 %v1158_v37 }
 0x1d1   : > { %1959 = vmatmul.msk.f32.gmra.mxu2 %vm867_vm1, %v921_v54  ;;  %1963 = vmatmul.msk.f32.gmra.mxu3 %vm867_vm1, %v921_v54 }
 0x1d9   : > { %1960 = vmatmul.msk.f32.gmra.mxu2 %vm867_vm1, %v922_v11  ;;  %1964 = vmatmul.msk.f32.gmra.mxu3 %vm867_vm1, %v922_v11 }
 0x1e1   : > { %1961 = vmatmul.msk.f32.gmra.mxu2 %vm867_vm1, %v923_v15  ;;  %1965 = vmatmul.msk.f32.gmra.mxu3 %vm867_vm1, %v923_v15 }
 0x224   : > { %v1089_v19 = vpop.f32.mrf.mxu1 }
 0x225   : > { %v1101_v12 = vsel %vm867_vm1, %v1089_v19, -inf }
 0x22a   : > { %v1092_v16 = vpop.f32.mrf.mxu3 }
 0x22b   : > { %v1102_v20 = vsel %vm867_vm1, %v1092_v16, -inf }
 0x22c   : > { %v1105_v23 = vmax.f32 %v1101_v12, %v1102_v20 }
 0x232   : > { %v1095_v17 = vpop.f32.mrf.mxu3 }
 0x233   : > { %v1103_v22 = vsel %vm867_vm1, %v1095_v17, -inf }
 0x23a   : > { %v1098_v57 = vpop.f32.mrf.mxu3 }
 0x23b   : > { %v1104_v14 = vsel %vm867_vm1, %v1098_v57, -inf }
 0x23c   : > { %v1106_v61 = vmax.f32 %v1103_v22, %v1104_v14 }
 0x23e   : > { %v1107_v24 = vmax.f32 %v1105_v23, %v1106_v61 }
 0x240   : > { %v1108_v25 = vrot.slane %v1107_v24, 4 }
 0x242   : > { %v1109_v1 = vmax.f32 %v1107_v24, %v1108_v25 }
 0x244   : > { %v1110_v4 = vrot.slane %v1109_v1, 2 }
 0x246   : > { %v1111_v9 = vmax.f32 %v1109_v1, %v1110_v4 }
 0x248   : > { %v1112_v13 = vrot.slane %v1111_v9, 1 }
 0x24a   : > { %v1113_v18 = vmax.f32 %v1111_v9, %v1112_v13 }
 0x24c   : > { %v1114_v30 = vsub.f32 %v1089_v19, %v1113_v18  ;;  %v1115_v31 = vsub.f32 %v1092_v16, %v1113_v18  ;;  %v1116_v33 = vsub.f32 %v1095_v17, %v1113_v18  ;;  %v1117_v35 = vsub.f32 %v1098_v57, %v1113_v18  ;;  %v1264_v20 = vpop.f32.mrf.mxu2  ;;  %v1293_v57 = vpop.f32.mrf.mxu3 }
 0x24e   : > { %v1118_v39 = vmul.f32 1.442695, %v1114_v30  ;;  %v1120_v36 = vmul.f32 1.442695, %v1115_v31  ;;  %v1122_v41 = vmul.f32 1.442695, %v1116_v33 }
 0x24f   : > { %v1124_v42 = vmul.f32 1.442695, %v1117_v35 }
 0x250   : > { %2065 = vpow2.f32 %v1118_v39 }
 0x251   : > { %2067 = vpow2.f32 %v1120_v36 }
 0x252   : > { %2069 = vpow2.f32 %v1122_v41 }
 0x253   : > { %2071 = vpow2.f32 %v1124_v42 }
 0x254   : > { %v1267_v61 = vpop.f32.mrf.mxu2  ;;  %v1296_v24 = vpop.f32.mrf.mxu3 }
 0x256   : > { %v2066_v43 = vpop.eup %2065 }
 0x257   : > { %v2068_v45 = vpop.eup %2067  ;;  %v1126_v46 = vsel %vm867_vm1, %v2066_v43, 0.0 }
 0x258   : > { %v2070_v47 = vpop.eup %2069  ;;  %v1127_v49 = vsel %vm867_vm1, %v2068_v45, 0.0 }
 0x259   : > { %v2072_v50 = vpop.eup %2071  ;;  %v1128_v51 = vadd.f32 %v1127_v49, %v1126_v46  ;;  %v1129_v52 = vsel %vm867_vm1, %v2070_v47, 0.0 }
 0x25a   : > { %v1131_v56 = vsel %vm867_vm1, %v2072_v50, 0.0 }
 0x25b   : > { %v1130_v55 = vadd.f32 %v1129_v52, %v1128_v51 }
 0x25c   : > { %v1270_v33 = vpop.f32.mrf.mxu2  ;;  %v1299_v35 = vpop.f32.mrf.mxu3 }
 0x25d   : > { %v1132_v58 = vadd.f32 %v1131_v56, %v1130_v55 }
 0x25f   : > { %v1133_v59 = vrot.slane %v1132_v58, 4 }
 0x261   : > { %v1134_v60 = vadd.f32 %v1133_v59, %v1132_v58 }
 0x263   : > { %v1135_v62 = vrot.slane %v1134_v60, 2 }
 0x264   : > { %v1273_v56 = vpop.f32.mrf.mxu2  ;;  %v1302_v58 = vpop.f32.mrf.mxu3 }
 0x265   : > { %v1136_v63 = vadd.f32 %v1135_v62, %v1134_v60 }
 0x267   : > { %v1137_v0 = vrot.slane %v1136_v63, 1 }
 0x269   : > { %v1138_v2 = vadd.f32 %v1137_v0, %v1136_v63 }
 0x26b   : > { %2073 = vrcp.f32 %v1138_v2  ;;  %v1150_v7 = vand.u32 2147483648, %v1138_v2  ;;  %v1148_v10 = vand.u32 2147483647, %v1138_v2  ;;  %vm1144_vm7 = vweird.f32 %v1138_v2 }
 0x26d   : > { %v1151_v54 = vor.u32 1.1754944e-38, %v1150_v7  ;;  %vm1149_vm9 = vcmp.eq.f32.partialorder %v1148_v10, 8.507059e+37 }
 0x271   : > { %v2074_v3 = vpop.eup %2073 }
 0x272   : > { %v1140_v5 = vmul.f32 %v2074_v3, %v1138_v2  ;;  %vm1145_vm6 = vweird.f32 %v2074_v3 }
 0x273   : > { %vm1146_vm8 = vmor %vm1144_vm7, %vm1145_vm6 }
 0x274   : > { %v1141_v6 = vsub.f32 1.0, %v1140_v5 }
 0x276   : > { %v1142_v8 = vmul.f32 %v2074_v3, %v1141_v6 }
 0x278   : > { %v1143_v53 = vadd.f32 %v2074_v3, %v1142_v8 }
 0x27a   : > { %v1147_v11 = vsel %vm1146_vm8, %v2074_v3, %v1143_v53 }
 0x27b   : > { %v1152_v15 = vsel %vm1149_vm9, %v1151_v54, %v1147_v11 }
 0x27c   : > { %v1153_v16 = vmul.f32 %v2066_v43, %v1152_v15  ;;  %v1154_v17 = vmul.f32 %v2068_v45, %v1152_v15  ;;  %v1155_v19 = vmul.f32 %v2070_v47, %v1152_v15  ;;  %v1156_v12 = vmul.f32 %v2072_v50, %v1152_v15 }
 0x27e   : > { %1950 = vmatmul.msk.f32.vlgmr.msra.gmra.mxu0 %vm867_vm1, %v1153_v16  ;;  %1954 = vmatmul.msk.f32.vlgmr.msra.gmra.mxu1 %vm867_vm1, %v1153_v16 }
 0x286   : > { %1951 = vmatmul.msk.f32.gmra.mxu0 %vm867_vm1, %v1154_v17  ;;  %1955 = vmatmul.msk.f32.gmra.mxu1 %vm867_vm1, %v1154_v17 }
 0x28e   : > { %1952 = vmatmul.msk.f32.gmra.mxu0 %vm867_vm1, %v1155_v19  ;;  %1956 = vmatmul.msk.f32.gmra.mxu1 %vm867_vm1, %v1155_v19 }
 0x296   : > { %1953 = vmatmul.msk.f32.gmra.mxu0 %vm867_vm1, %v1156_v12  ;;  %1957 = vmatmul.msk.f32.gmra.mxu1 %vm867_vm1, %v1156_v12 }
 0x2fb   : > { %v1190_v22 = vpop.f32.mrf.mxu0  ;;  %v1219_v14 = vpop.f32.mrf.mxu1 }
 0x2fc   : > { %v1305_v23 = vmul.f32 %v1264_v20, %v1190_v22  ;;  %v1306_v1 = vmul.f32 %v1293_v57, %v1219_v14 }
 0x2fe   : > { %v1313_v25 = vsub.f32 0.0, %v1305_v23  ;;  %v1314_v9 = vsub.f32 0.0, %v1306_v1 }
 0x300   : > { %v1321_v4 = vmul.f32 1.442695, %v1313_v25  ;;  %v1323_v27 = vmul.f32 1.442695, %v1314_v9 }
 0x302   : > { %2075 = vpow2.f32 %v1321_v4 }
 0x303   : > { %v1193_v13 = vpop.f32.mrf.mxu0  ;;  %v1222_v18 = vpop.f32.mrf.mxu1  ;;  %2077 = vpow2.f32 %v1323_v27  ;;  %v2211_v27 = vmov 0  }
 0x304   : > { %v1307_v21 = vmul.f32 %v1267_v61, %v1193_v13  ;;  %v1308_v26 = vmul.f32 %v1296_v24, %v1222_v18  ;;  %v1478_v61 = vld [vmem:[%s3155_s9 + $0x8] sm:$0xff]  ;;  %2054 = vset.pattern.permute.xlu1 %v2211_v27  ;;  %2053 = vset.pattern.permute.xlu0 %v2211_v27 }
 0x305   : > { %1488 = vperm.xlu1 %2054, %v1478_v61  }
 0x306   : > { %v1315_v30 = vsub.f32 0.0, %v1307_v21  ;;  %v1316_v31 = vsub.f32 0.0, %v1308_v26 }
 0x308   : > { %v1325_v37 = vmul.f32 1.442695, %v1315_v30  ;;  %v2076_v39 = vpop.eup %2075  ;;  %v1327_v36 = vmul.f32 1.442695, %v1316_v31 }
 0x309   : > { %v2785_v43 = vadd.f32 1.0, %v2076_v39  ;;  %v2078_v50 = vpop.eup %2077 }
 0x30a   : > { %2079 = vpow2.f32 %v1325_v37  ;;  %v2788_v60 = vadd.f32 1.0, %v2078_v50 }
 0x30b   : > { %v1196_v41 = vpop.f32.mrf.mxu0  ;;  %v1225_v42 = vpop.f32.mrf.mxu1  ;;  %2081 = vpow2.f32 %v1327_v36  ;;  %v1356_v57 = vand.u32 2147483648, %v2785_v43  ;;  %vm1350_vm10 = vweird.f32 %v2785_v43  ;;  %v1354_v18 = vand.u32 2147483647, %v2785_v43 }
 0x30c   : > { %v1309_v45 = vmul.f32 %v1270_v33, %v1196_v41  ;;  %v1310_v46 = vmul.f32 %v1299_v35, %v1225_v42  ;;  %2083 = vrcp.f32 %v2785_v43  ;;  %v1369_v26 = vand.u32 2147483647, %v2788_v60 }
 0x30d   : > { %v2830_v21 = vor.u32 1.1754944e-38, %v1356_v57  ;;  %v1371_v36 = vand.u32 2147483648, %v2788_v60  ;;  %vm2917_vm9 = vcmp.eq.f32.partialorder %v1354_v18, 8.507059e+37  ;;  %v1480_v18 = vld [vmem:[%s3155_s9 + $0x18] sm:$0xff] }
 0x30e   : > { %v1317_v47 = vsub.f32 0.0, %v1309_v45  ;;  %v1318_v49 = vsub.f32 0.0, %v1310_v46  ;;  %1498 = vperm.xlu0 %2053, %v1480_v18  }
 0x310   : > { %v1329_v51 = vmul.f32 1.442695, %v1317_v47  ;;  %v1331_v52 = vmul.f32 1.442695, %v1318_v49  ;;  %v2080_v55 = vpop.eup %2079 }
 0x311   : > { %v2082_v59 = vpop.eup %2081  ;;  %v2790_v0 = vadd.f32 1.0, %v2080_v55 }
 0x312   : > { %2085 = vpow2.f32 %v1329_v51  ;;  %v2792_v5 = vadd.f32 1.0, %v2082_v59  ;;  %v2794_v6 = vpop.eup %2083 }
 0x313   : > { %v1199_v62 = vpop.f32.mrf.mxu0  ;;  %v1228_v63 = vpop.f32.mrf.mxu1  ;;  %2087 = vpow2.f32 %v1331_v52  ;;  %v1346_v15 = vmul.f32 %v2794_v6, %v2785_v43  ;;  %v1386_v33 = vand.u32 2147483648, %v2790_v0  ;;  %vm1351_vm11 = vweird.f32 %v2794_v6 }
 0x314   : > { %v1311_v2 = vmul.f32 %v1273_v56, %v1199_v62  ;;  %v1312_v3 = vmul.f32 %v1302_v58, %v1228_v63  ;;  %2089 = vrcp.f32 %v2788_v60  ;;  %vm1380_vm12 = vweird.f32 %v2790_v0  ;;  %vm2864_vm14 = vmor %vm1350_vm10, %vm1351_vm11  ;;  %v1477_v63 = vld [vmem:[%s3155_s9] sm:$0xff] }
 0x315   : > { %2091 = vrcp.f32 %v2790_v0  ;;  %v1347_v12 = vsub.f32 1.0, %v1346_v15  ;;  %v1384_v49 = vand.u32 2147483647, %v2790_v0  ;;  %v2853_v51 = vor.u32 1.1754944e-38, %v1386_v33  ;;  %1483 = vperm.xlu1 %2054, %v1477_v63  }
 0x316   : > { %v1319_v7 = vsub.f32 0.0, %v1311_v2  ;;  %v1320_v8 = vsub.f32 0.0, %v1312_v3  ;;  %2093 = vrcp.f32 %v2792_v5  ;;  %v1399_v55 = vand.u32 2147483647, %v2792_v5 }
 0x317   : > { %v1348_v4 = vmul.f32 %v2794_v6, %v1347_v12  ;;  %v1401_v59 = vand.u32 2147483648, %v2792_v5  ;;  %vm2897_vm8 = vcmp.eq.f32.partialorder %v1384_v49, 8.507059e+37 }
 0x318   : > { %v2086_v10 = vpop.eup %2085  ;;  %v1333_v53 = vmul.f32 1.442695, %v1319_v7  ;;  %v1335_v54 = vmul.f32 1.442695, %v1320_v8 }
 0x319   : > { %v2799_v11 = vadd.f32 1.0, %v2086_v10  ;;  %v2088_v16 = vpop.eup %2087  ;;  %v2847_v42 = vadd.f32 %v2794_v6, %v1348_v4 }
 0x31a   : > { %2095 = vpow2.f32 %v1333_v53  ;;  %v2804_v17 = vadd.f32 1.0, %v2088_v16  ;;  %v2806_v19 = vpop.eup %2089  ;;  %v1402_v53 = vor.u32 1.1754944e-38, %v1401_v59 }
 0x31b   : > { %2097 = vrcp.f32 %v2799_v11  ;;  %v2809_v20 = vpop.eup %2091  ;;  %v1361_v23 = vmul.f32 %v2806_v19, %v2788_v60  ;;  %v1414_v46 = vand.u32 2147483647, %v2799_v11  ;;  %v1416_v50 = vand.u32 2147483648, %v2799_v11 }
 0x31c   : > { %2099 = vpow2.f32 %v1335_v54  ;;  %v2812_v22 = vpop.eup %2093  ;;  %v1376_v1 = vmul.f32 %v2809_v20, %v2790_v0  ;;  %v1429_v58 = vand.u32 2147483647, %v2804_v17  ;;  %vm1381_vm13 = vweird.f32 %v2809_v20 }
 0x31d   : > { %2101 = vrcp.f32 %v2804_v17  ;;  %v1391_v35 = vmul.f32 %v2812_v22, %v2792_v5  ;;  %v1362_v45 = vsub.f32 1.0, %v1361_v23  ;;  %vm1410_vm15 = vweird.f32 %v2799_v11  ;;  %vm2911_vm0 = vmor %vm1380_vm12, %vm1381_vm13 }
 0x31e   : > { %v1377_v41 = vsub.f32 1.0, %v1376_v1  ;;  %v1353_v7 = vsel %vm2864_vm14, %v2794_v6, %v2847_v42  ;;  %vm2880_vm2 = vcmp.eq.f32.partialorder %v1414_v46, 8.507059e+37  ;;  %vm1425_vm3 = vweird.f32 %v2804_v17  ;;  %v1473_v42 = vld [vmem:[%s3154_s8] sm:$0xff] }
 0x31f   : > { %v1392_v52 = vsub.f32 1.0, %v1391_v35  ;;  %v1363_v8 = vmul.f32 %v2806_v19, %v1362_v45  ;;  %v1417_v16 = vor.u32 1.1754944e-38, %v1416_v50  ;;  %v1431_v12 = vand.u32 2147483648, %v2804_v17 }
 0x320   : > { %v2096_v14 = vpop.eup %2095  ;;  %v1378_v3 = vmul.f32 %v2809_v20, %v1377_v41  ;;  %vm1396_vm5 = vweird.f32 %v2812_v22  ;;  %vm2893_vm7 = vcmp.eq.f32.partialorder %v1429_v58, 8.507059e+37  ;;  %vm1370_vm14 = vcmp.eq.f32.partialorder %v1369_v26, 8.507059e+37 }
 0x321   : > { %v2820_v24 = vpop.eup %2097  ;;  %v2822_v25 = vadd.f32 1.0, %v2096_v14  ;;  %v1393_v57 = vmul.f32 %v2812_v22, %v1392_v52 }
 0x322   : > { %v2100_v9 = vpop.eup %2099  ;;  %v1406_v13 = vmul.f32 %v2820_v24, %v2799_v11  ;;  %vm1411_vm6 = vweird.f32 %v2820_v24  ;;  %v1379_v27 = vadd.f32 %v2809_v20, %v1378_v3  ;;  %v1579_v11 = vld [vmem:[%s3156_s10] sm:$0xff] }
 0x323   : > { %v2833_v30 = vpop.eup %2101  ;;  %2103 = vrcp.f32 %v2822_v25  ;;  %v2836_v31 = vadd.f32 1.0, %v2100_v9  ;;  %v1444_v9 = vand.u32 2147483647, %v2822_v25  ;;  %vm1440_vm4 = vweird.f32 %v2822_v25  ;;  %vm2928_vm12 = vmor %vm1410_vm15, %vm1411_vm6 }
 0x324   : > { %v1407_v37 = vsub.f32 1.0, %v1406_v13  ;;  %v1421_v39 = vmul.f32 %v2833_v30, %v2804_v17  ;;  %v1446_v13 = vand.u32 2147483648, %v2822_v25  ;;  %vm1426_vm10 = vweird.f32 %v2833_v30 }
 0x325   : > { %2105 = vrcp.f32 %v2836_v31  ;;  %v1459_v45 = vand.u32 2147483647, %v2836_v31  ;;  %v1461_v46 = vand.u32 2147483648, %v2836_v31  ;;  %v1394_v43 = vadd.f32 %v2812_v22, %v1393_v57  ;;  %vm2943_vm15 = vmor %vm1425_vm3, %vm1426_vm10 }
 0x326   : > { %v1422_v47 = vsub.f32 1.0, %v1421_v39  ;;  %v1408_v56 = vmul.f32 %v2820_v24, %v1407_v37  ;;  %vm1445_vm1 = vcmp.eq.f32.partialorder %v1444_v9, 8.507059e+37  ;;  %v1447_v50 = vor.u32 1.1754944e-38, %v1446_v13 }
 0x327   : > { %v1383_v52 = vsel %vm2911_vm0, %v2809_v20, %v1379_v27  ;;  %vm3188_vm3 = vweird.f32 %v2792_v5  ;;  %v1462_v20 = vor.u32 1.1754944e-38, %v1461_v46  ;;  %vm1460_vm10 = vcmp.eq.f32.partialorder %v1459_v45, 8.507059e+37 }
 0x328   : > { %v1423_v54 = vmul.f32 %v2833_v30, %v1422_v47  ;;  %v1409_v61 = vadd.f32 %v2820_v24, %v1408_v56  ;;  %v1364_v56 = vadd.f32 %v2806_v19, %v1363_v8 }
 0x329   : > { %v2104_v2 = vpop.eup %2103 }
 0x32a   : > { %v1436_v10 = vmul.f32 %v2104_v2, %v2822_v25  ;;  %vm1441_vm11 = vweird.f32 %v2104_v2  ;;  %v1424_v37 = vadd.f32 %v2833_v30, %v1423_v54  ;;  %v1413_v49 = vsel %vm2928_vm12, %v2820_v24, %v1409_v61 }
 0x32b   : > { %v2106_v15 = vpop.eup %2105  ;;  %vm1442_vm6 = vmor %vm1440_vm4, %vm1441_vm11  ;;  %vm1455_vm12 = vweird.f32 %v2836_v31 }
 0x32c   : > { %v1437_v14 = vsub.f32 1.0, %v1436_v10  ;;  %v1451_v23 = vmul.f32 %v2106_v15, %v2836_v31  ;;  %vm1456_vm13 = vweird.f32 %v2106_v15  ;;  %v1428_v17 = vsel %vm2943_vm15, %v2833_v30, %v1424_v37  ;;  %vm2960_vm4 = vmor %vm3188_vm3, %vm1396_vm5 }
 0x32d   : > { %vm1457_vm0 = vmor %vm1455_vm12, %vm1456_vm13  ;;  %v1432_v31 = vor.u32 1.1754944e-38, %v1431_v12  ;;  %v1398_v30 = vsel %vm2960_vm4, %v2812_v22, %v1394_v43 }
 0x32e   : > { %v1452_v33 = vsub.f32 1.0, %v1451_v23  ;;  %v1438_v35 = vmul.f32 %v2104_v2, %v1437_v14  ;;  %v1388_v14 = vsel %vm2897_vm8, %v2853_v51, %v1383_v52  ;;  %vm3195_vm8 = vcmask 261120   ;;  %v1580_v52 = vld [vmem:[%s3156_s10 + $0x8] sm:$0xff] }
 0x32f   : > { %v1433_v57 = vsel %vm2893_vm7, %v1432_v31, %v1428_v17  ;;  %vm1400_vm7 = vcmp.eq.f32.partialorder %v1399_v55, 8.507059e+37  ;;  %vm3197_vm11 = vmmov %vm3195_vm8  ;;  %v2139_v17 = vld [vmem:[%s2341_s30] sm:$0xff] }
 0x330   : > { %v1439_v47 = vadd.f32 %v2104_v2, %v1438_v35  ;;  %v1453_v25 = vmul.f32 %v2106_v15, %v1452_v33  ;;  %v1403_v59 = vsel %vm1400_vm7, %v1402_v53, %v1398_v30  ;;  %v1470_v5 = vmul.f32 %v1433_v57, %v2514_v40  ;;  %vm3198_vm13 = vmmov %vm3195_vm8  ;;  %v2141_v57 = vld [vmem:[%s2341_s30 + $0x10] sm:$0xff] }
 0x331   : > { %vm3199_vm15 = vmmov %vm3195_vm8 }
 0x332   : > { %v1443_v24 = vsel %vm1442_vm6, %v2104_v2, %v1439_v47  ;;  %v1454_v58 = vadd.f32 %v2106_v15, %v1453_v25  ;;  %v1418_v2 = vsel %vm2880_vm2, %v1417_v16, %v1413_v49  ;;  %vm3192_vm2 = vweird.f32 %v2788_v60  ;;  %vm3200_vm6 = vmmov %vm3195_vm8 }
 0x333   : > { %v1448_v3 = vsel %vm1445_vm1, %v1447_v50, %v1443_v24  ;;  %vm3191_vm1 = vweird.f32 %v2806_v19  ;;  %v1358_v16 = vsel %vm2917_vm9, %v2830_v21, %v1353_v7  ;;  %v1468_v21 = vmul.f32 %v1403_v59, %v2506_v34  ;;  %vm3196_vm9 = vmmov %vm3195_vm8  ;;  %v1582_v24 = vld [vmem:[%s3156_s10 + $0x18] sm:$0xff] }
 0x334   : > { %v1471_v8 = vmul.f32 %v1448_v3, %v2519_v44  ;;  %v1458_v10 = vsel %vm1457_vm0, %v2106_v15, %v1454_v58  ;;  %vm2982_vm5 = vmor %vm3192_vm2, %vm3191_vm1  ;;  %v1469_v15 = vmul.f32 %v1418_v2, %v2511_v38  ;;  %v1372_v38 = vor.u32 1.1754944e-38, %v1371_v36  ;;  %v2140_v2 = vld [vmem:[%s2341_s30 + $0x8] sm:$0xff] }
 0x335   : > { %v1463_v54 = vsel %vm1460_vm10, %v1462_v20, %v1458_v10  ;;  %v1368_v51 = vsel %vm2982_vm5, %v2806_v19, %v1364_v56  ;;  %v1467_v19 = vmul.f32 %v1388_v14, %v2503_v32  ;;  %v1465_v36 = vmul.f32 %v1358_v16, %v2490_v28  ;;  %v1474_v32 = vld [vmem:[%s3154_s8 + $0x8] sm:$0xff]  ;;  %v1475_v28 = vld [vmem:[%s3154_s8 + $0x10] sm:$0xff]  ;;  %vm3201_vm12 = vmmov %vm3200_vm6 }
 0x336   : > { %1525 = vmatpush.msrb.mxu0 %v1471_v8  ;;  %v1472_v22 = vmul.f32 %v1463_v54, %v2524_v48  ;;  %v1479_v48 = vld [vmem:[%s3155_s9 + $0x10] sm:$0xff]  ;;  %v1373_v6 = vsel %vm1370_vm14, %v1372_v38, %v1368_v51  ;;  %vm3202_vm3 = vmmov %vm3200_vm6 }
 0x337   : > { %1493 = vperm.xlu0 %2053, %v1479_v48   ;;  %v1466_v40 = vmul.f32 %v1373_v6, %v2492_v29  ;;  %v1476_v29 = vld [vmem:[%s3154_s8 + $0x18] sm:$0xff]  ;;  %vm3203_vm4 = vmmov %vm3202_vm3  ;;  %v1581_v56 = vld [vmem:[%s3156_s10 + $0x10] sm:$0xff] }
 0x338   : > { %1554 = vmatpush.msrb.mxu1 %v1472_v22  ;;  %1526 = vmatpush.msrb.mxu0 %v1469_v15  ;;  %vm3204_vm0 = vmmov %vm3202_vm3  ;;  %v2142_v22 = vld [vmem:[%s2341_s30 + $0x18] sm:$0xff] }
 0x339   : > { %vm3205_vm10 = vmmov %vm3204_vm0 }
 0x33a   : > { %1555 = vmatpush.msrb.mxu1 %v1470_v5  ;;  %1527 = vmatpush.msrb.mxu0 %v1467_v19  ;;  %vm3206_vm1 = vmmov %vm3204_vm0 }
 0x33b   : > { %vm3207_vm2 = vmmov %vm3204_vm0 }
 0x33c   : > { %1556 = vmatpush.msrb.mxu1 %v1468_v21  ;;  %1528 = vmatpush.msrb.mxu0 %v1465_v36  ;;  %vm3208_vm5 = vmmov %vm3204_vm0  ;;  %v2143_v21 = vld [vmem:[%s2341_s30 + $0x20] sm:$0xff] }
 0x33d   : > { %1966 = vmatmul.msk.f32.vlgmr.msrb.gmra.mxu0 %vm3195_vm8, %v1473_v42  ;;  %vm3209_vm7 = vmmov %vm3204_vm0 }
 0x33e   : > { %1557 = vmatpush.msrb.mxu1 %v1466_v40  ;;  %vm3210_vm14 = vmmov %vm3204_vm0 }
 0x33f   : > { %1970 = vmatmul.msk.f32.vlgmr.msrb.gmra.mxu1 %vm3196_vm9, %v1473_v42 }
 0x345   : > { %1967 = vmatmul.msk.f32.gmra.mxu0 %vm3197_vm11, %v1474_v32 }
 0x347   : > { %1971 = vmatmul.msk.f32.gmra.mxu1 %vm3198_vm13, %v1474_v32  ;;  %v2144_v32 = vld [vmem:[%s2341_s30 + $0x28] sm:$0xff] }
 0x34d   : > { %1968 = vmatmul.msk.f32.gmra.mxu0 %vm3199_vm15, %v1475_v28 }
 0x34f   : > { %1972 = vmatmul.msk.f32.gmra.mxu1 %vm3200_vm6, %v1475_v28 }
 0x355   : > { %1969 = vmatmul.msk.f32.gmra.mxu0 %vm3201_vm12, %v1476_v29 }
 0x357   : > { %1973 = vmatmul.msk.f32.gmra.mxu1 %vm3202_vm3, %v1476_v29 }
 0x377   : > { %v1489_v7 = vpop.permute.xlu1 %1488 }
 0x380   : > { %v1499_v62 = vpop.permute.xlu0 %1498 }
 0x387   : > { %v1484_v13 = vpop.permute.xlu1 %1483 }
 0x3a9   : > { %v1494_v61 = vpop.permute.xlu0 %1493 }
 0x3ba   : > { %v1530_v34 = vpop.f32.mrf.mxu0 }
 0x3bb   : > { %v1531_v41 = vadd.f32 %v1530_v34, %v1484_v13 }
 0x3bc   : > { %v1559_v60 = vpop.f32.mrf.mxu1 }
 0x3bd   : > { %v1560_v43 = vadd.f32 %v1559_v60, %v1484_v13  ;;  %v1571_v25 = vmax.f32 %v1531_v41, 0.0  ;;  %v2145_v41 = vld [vmem:[%s2341_s30 + $0x30] sm:$0xff] }
 0x3bf   : > { %v1572_v50 = vmax.f32 %v1560_v43, 0.0 }
 0x3c2   : > { %v1533_v26 = vpop.f32.mrf.mxu0 }
 0x3c3   : > { %v1534_v33 = vadd.f32 %v1533_v26, %v1489_v7 }
 0x3c4   : > { %v1562_v55 = vpop.f32.mrf.mxu1 }
 0x3c5   : > { %v1563_v45 = vadd.f32 %v1562_v55, %v1489_v7  ;;  %v1573_v18 = vmax.f32 %v1534_v33, 0.0 }
 0x3c7   : > { %v1574_v49 = vmax.f32 %v1563_v45, 0.0 }
 0x3ca   : > { %v1536_v12 = vpop.f32.mrf.mxu0 }
 0x3cb   : > { %v1537_v4 = vadd.f32 %v1536_v12, %v1494_v61 }
 0x3cc   : > { %v1565_v23 = vpop.f32.mrf.mxu1 }
 0x3cd   : > { %v1566_v35 = vadd.f32 %v1565_v23, %v1494_v61  ;;  %v1575_v46 = vmax.f32 %v1537_v4, 0.0 }
 0x3cf   : > { %v1576_v47 = vmax.f32 %v1566_v35, 0.0 }
 0x3d2   : > { %v1539_v1 = vpop.f32.mrf.mxu0 }
 0x3d3   : > { %v1540_v9 = vadd.f32 %v1539_v1, %v1499_v62 }
 0x3d4   : > { %v1568_v27 = vpop.f32.mrf.mxu1 }
 0x3d5   : > { %v1577_v37 = vmax.f32 %v1540_v9, 0.0  ;;  %v1569_v39 = vadd.f32 %v1568_v27, %v1499_v62 }
 0x3d7   : > { %v1578_v0 = vmax.f32 %v1569_v39, 0.0  ;;  %1607 = vmatpush.msra.mxu2 %v1577_v37 }
 0x3d9   : > { %1636 = vmatpush.msra.mxu3 %v1578_v0  ;;  %1608 = vmatpush.msra.mxu2 %v1575_v46 }
 0x3db   : > { %1637 = vmatpush.msra.mxu3 %v1576_v47  ;;  %1609 = vmatpush.msra.mxu2 %v1573_v18  ;;  %v2146_v18 = vld [vmem:[%s2341_s30 + $0x38] sm:$0xff]  ;;  %s3089_s30 = scalar_lea.vmem [#allocation2], %s3071_s16 }
 0x3dc   : > { %s1834_s29 = sshll.u32 %s3089_s30, 4  ;;  %s1835_s29 = int_to_ptr.vmem [resolvable:$true] %s1834_s29 }
 0x3dd   : > { %1638 = vmatpush.msra.mxu3 %v1574_v49  ;;  %1610 = vmatpush.msra.mxu2 %v1571_v25 }
 0x3de   : > { %1974 = vmatmul.msk.f32.vlgmr.msra.gmra.mxu2 %vm3203_vm4, %v1579_v11 }
 0x3df   : > { %1639 = vmatpush.msra.mxu3 %v1572_v50 }
 0x3e0   : > { %1978 = vmatmul.msk.f32.vlgmr.msra.gmra.mxu3 %vm3204_vm0, %v1579_v11 }
 0x3e6   : > { %1975 = vmatmul.msk.f32.gmra.mxu2 %vm3205_vm10, %v1580_v52 }
 0x3e8   : > { %1979 = vmatmul.msk.f32.gmra.mxu3 %vm3206_vm1, %v1580_v52 }
 0x3ee   : > { %1976 = vmatmul.msk.f32.gmra.mxu2 %vm3207_vm2, %v1581_v56 }
 0x3f0   : > { %1980 = vmatmul.msk.f32.gmra.mxu3 %vm3208_vm5, %v1581_v56 }
 0x3f6   : > { %1977 = vmatmul.msk.f32.gmra.mxu2 %vm3209_vm7, %v1582_v24 }
 0x3f8   : > { %1981 = vmatmul.msk.f32.gmra.mxu3 %vm3210_vm14, %v1582_v24 }
 0x461   : > { %v1612_v58 = vpop.f32.mrf.mxu2 }
 0x462   : > { %v1653_v63 = vadd.f32 %v2139_v17, %v1612_v58 }
 0x463   : > { %v1641_v3 = vpop.f32.mrf.mxu3 }
 0x464   : > { %v1661_v20 = vsub.f32 0.0, %v1653_v63  ;;  %v1654_v31 = vadd.f32 %v2140_v2, %v1641_v3 }
 0x466   : > { %v1669_v8 = vmul.f32 1.442695, %v1661_v20  ;;  %v1662_v10 = vsub.f32 0.0, %v1654_v31 }
 0x468   : > { %2107 = vpow2.f32 %v1669_v8  ;;  %v1671_v30 = vmul.f32 1.442695, %v1662_v10 }
 0x469   : > { %v1615_v54 = vpop.f32.mrf.mxu2 }
 0x46a   : > { %2109 = vpow2.f32 %v1671_v30  ;;  %v1655_v14 = vadd.f32 %v2141_v57, %v1615_v54 }
 0x46b   : > { %v1644_v53 = vpop.f32.mrf.mxu3 }
 0x46c   : > { %v1663_v44 = vsub.f32 0.0, %v1655_v14  ;;  %v1656_v15 = vadd.f32 %v2142_v22, %v1644_v53 }
 0x46e   : > { %v2108_v51 = vpop.eup %2107  ;;  %v1673_v59 = vmul.f32 1.442695, %v1663_v44  ;;  %v1664_v16 = vsub.f32 0.0, %v1656_v15 }
 0x46f   : > { %v1685_v38 = vadd.f32 1.0, %v2108_v51 }
 0x470   : > { %v2110_v48 = vpop.eup %2109  ;;  %2111 = vpow2.f32 %v1673_v59  ;;  %v1675_v5 = vmul.f32 1.442695, %v1664_v16 }
 0x471   : > { %2113 = vrcp.f32 %v1685_v38  ;;  %v1618_v19 = vpop.f32.mrf.mxu2  ;;  %v3057_v6 = vadd.f32 1.0, %v2110_v48  ;;  %v1702_v12 = vand.u32 2147483647, %v1685_v38  ;;  %v1704_v23 = vand.u32 2147483648, %v1685_v38 }
 0x472   : > { %2115 = vpow2.f32 %v1675_v5  ;;  %v1657_v36 = vadd.f32 %v2143_v21, %v1618_v19  ;;  %vm1698_vm8 = vweird.f32 %v1685_v38 }
 0x473   : > { %v1647_v42 = vpop.f32.mrf.mxu3  ;;  %2117 = vrcp.f32 %v3057_v6  ;;  %vm3074_vm11 = vcmp.eq.f32.partialorder %v1702_v12, 8.507059e+37  ;;  %v1705_v0 = vor.u32 1.1754944e-38, %v1704_v23  ;;  %v1719_v43 = vand.u32 2147483648, %v3057_v6 }
 0x474   : > { %v1665_v40 = vsub.f32 0.0, %v1657_v36  ;;  %v1658_v28 = vadd.f32 %v2144_v32, %v1647_v42  ;;  %v1717_v11 = vand.u32 2147483647, %v3057_v6  ;;  %vm1713_vm6 = vweird.f32 %v3057_v6 }
 0x475   : > { %v1720_v31 = vor.u32 1.1754944e-38, %v1719_v43 }
 0x476   : > { %v2112_v29 = vpop.eup %2111  ;;  %v1677_v26 = vmul.f32 1.442695, %v1665_v40  ;;  %v1666_v55 = vsub.f32 0.0, %v1658_v28  ;;  %vm1718_vm3 = vcmp.eq.f32.partialorder %v1717_v11, 8.507059e+37 }
 0x477   : > { %v2114_v34 = vpop.eup %2113  ;;  %v3062_v60 = vadd.f32 1.0, %v2112_v29 }
 0x478   : > { %v2116_v62 = vpop.eup %2115  ;;  %v1694_v7 = vmul.f32 %v2114_v34, %v1685_v38  ;;  %v1679_v9 = vmul.f32 1.442695, %v1666_v55  ;;  %vm1699_vm9 = vweird.f32 %v2114_v34 }
 0x479   : > { %2119 = vrcp.f32 %v3062_v60  ;;  %v2118_v61 = vpop.eup %2117  ;;  %v3066_v4 = vadd.f32 1.0, %v2116_v62  ;;  %v1621_v13 = vpop.f32.mrf.mxu2  ;;  %vm1700_vm13 = vmor %vm1698_vm8, %vm1699_vm9  ;;  %v1734_v10 = vand.u32 2147483648, %v3062_v60  ;;  %v1732_v22 = vand.u32 2147483647, %v3062_v60 }
 0x47a   : > { %v1695_v1 = vsub.f32 1.0, %v1694_v7  ;;  %2121 = vpow2.f32 %v1677_v26  ;;  %v1709_v27 = vmul.f32 %v2118_v61, %v3057_v6  ;;  %v1659_v45 = vadd.f32 %v2145_v41, %v1621_v13 }
 0x47b   : > { %v1650_v33 = vpop.f32.mrf.mxu3  ;;  %2123 = vrcp.f32 %v3066_v4  ;;  %vm1714_vm15 = vweird.f32 %v2118_v61  ;;  %vm1728_vm0 = vweird.f32 %v3062_v60  ;;  %v1735_v16 = vor.u32 1.1754944e-38, %v1734_v10 }
 0x47c   : > { %v1696_v35 = vmul.f32 %v2114_v34, %v1695_v1  ;;  %v1710_v39 = vsub.f32 1.0, %v1709_v27  ;;  %2125 = vpow2.f32 %v1679_v9  ;;  %v1660_v47 = vadd.f32 %v2146_v18, %v1650_v33  ;;  %vm1715_vm12 = vmor %vm1713_vm6, %vm1714_vm15 }
 0x47d   : > { %v1667_v50 = vsub.f32 0.0, %v1659_v45  ;;  %v1749_v38 = vand.u32 2147483648, %v3066_v4  ;;  %v1747_v5 = vand.u32 2147483647, %v3066_v4  ;;  %vm1733_vm2 = vcmp.eq.f32.partialorder %v1732_v22, 8.507059e+37 }
 0x47e   : > { %v1697_v46 = vadd.f32 %v2114_v34, %v1696_v35  ;;  %v1711_v49 = vmul.f32 %v2118_v61, %v1710_v39  ;;  %v1668_v58 = vsub.f32 0.0, %v1660_v47  ;;  %vm1743_vm5 = vweird.f32 %v3066_v4 }
 0x47f   : > { %v2120_v25 = vpop.eup %2119  ;;  %v1681_v20 = vmul.f32 1.442695, %v1667_v50  ;;  %v1750_v42 = vor.u32 1.1754944e-38, %v1749_v38  ;;  %vm1748_vm14 = vcmp.eq.f32.partialorder %v1747_v5, 8.507059e+37 }
 0x480   : > { %v2122_v52 = vpop.eup %2121  ;;  %v1701_v56 = vsel %vm1700_vm13, %v2114_v34, %v1697_v46  ;;  %v1724_v24 = vmul.f32 %v2120_v25, %v3062_v60  ;;  %v1712_v63 = vadd.f32 %v2118_v61, %v1711_v49  ;;  %v1683_v30 = vmul.f32 1.442695, %v1668_v58 }
 0x481   : > { %v1706_v17 = vsel %vm3074_vm11, %v1705_v0, %v1701_v56  ;;  %v3086_v3 = vadd.f32 1.0, %v2122_v52  ;;  %v2124_v2 = vpop.eup %2123  ;;  %vm1729_vm4 = vweird.f32 %v2120_v25 }
 0x482   : > { %1813 = vst [vmem:[%s3089_s30] sm:$0xff] %v1706_v17  ;;  %v1725_v8 = vsub.f32 1.0, %v1724_v24  ;;  %v2126_v54 = vpop.eup %2125  ;;  %v1716_v57 = vsel %vm1715_vm12, %v2118_v61, %v1712_v63  ;;  %v1739_v14 = vmul.f32 %v2124_v2, %v3066_v4  ;;  %vm1730_vm10 = vmor %vm1728_vm0, %vm1729_vm4  ;;  %vm1744_vm1 = vweird.f32 %v2124_v2 }
 0x483   : > { %2127 = vrcp.f32 %v3086_v3  ;;  %v1721_v53 = vsel %vm1718_vm3, %v1720_v31, %v1716_v57  ;;  %v1690_v51 = vadd.f32 1.0, %v2126_v54  ;;  %vm1745_vm7 = vmor %vm1743_vm5, %vm1744_vm1  ;;  %v1762_v62 = vand.u32 2147483647, %v3086_v3 }
 0x484   : > { %v1726_v44 = vmul.f32 %v2120_v25, %v1725_v8  ;;  %1814 = vst [vmem:[%s3089_s30 + $0x8] sm:$0xff] %v1721_v53  ;;  %v1740_v15 = vsub.f32 1.0, %v1739_v14  ;;  %2129 = vpow2.f32 %v1681_v20  ;;  %v1764_v7 = vand.u32 2147483648, %v3086_v3 }
 0x485   : > { %2131 = vpow2.f32 %v1683_v30  ;;  %vm1758_vm9 = vweird.f32 %v3086_v3  ;;  %vm1763_vm13 = vcmp.eq.f32.partialorder %v1762_v62, 8.507059e+37  ;;  %v1779_v13 = vand.u32 2147483648, %v1690_v51 }
 0x486   : > { %v1727_v59 = vadd.f32 %v2120_v25, %v1726_v44  ;;  %v1741_v48 = vmul.f32 %v2124_v2, %v1740_v15  ;;  %2133 = vrcp.f32 %v1690_v51  ;;  %v1765_v9 = vor.u32 1.1754944e-38, %v1764_v7 }
 0x487   : > { %v1777_v35 = vand.u32 2147483647, %v1690_v51  ;;  %vm1773_vm6 = vweird.f32 %v1690_v51  ;;  %v1780_v46 = vor.u32 1.1754944e-38, %v1779_v13 }
 0x488   : > { %v1731_v19 = vsel %vm1730_vm10, %v2120_v25, %v1727_v59  ;;  %v1742_v36 = vadd.f32 %v2124_v2, %v1741_v48 }
 0x489   : > { %v2128_v6 = vpop.eup %2127  ;;  %v1736_v21 = vsel %vm1733_vm2, %v1735_v16, %v1731_v19  ;;  %vm1778_vm3 = vcmp.eq.f32.partialorder %v1777_v35, 8.507059e+37 }
 0x48a   : > { %1815 = vst [vmem:[%s3089_s30 + $0x10] sm:$0xff] %v1736_v21  ;;  %v1754_v40 = vmul.f32 %v2128_v6, %v3086_v3  ;;  %v2130_v32 = vpop.eup %2129  ;;  %v1746_v28 = vsel %vm1745_vm7, %v2124_v2, %v1742_v36  ;;  %vm1759_vm8 = vweird.f32 %v2128_v6 }
 0x48b   : > { %v2132_v29 = vpop.eup %2131  ;;  %v1751_v34 = vsel %vm1748_vm14, %v1750_v42, %v1746_v28  ;;  %v1691_v26 = vadd.f32 1.0, %v2130_v32  ;;  %vm1760_vm11 = vmor %vm1758_vm9, %vm1759_vm8 }
 0x48c   : > { %v1755_v60 = vsub.f32 1.0, %v1754_v40  ;;  %v2134_v55 = vpop.eup %2133  ;;  %1816 = vst [vmem:[%s3089_s30 + $0x18] sm:$0xff] %v1751_v34  ;;  %v1692_v12 = vadd.f32 1.0, %v2132_v29 }
 0x48d   : > { %v1769_v61 = vmul.f32 %v2134_v55, %v1690_v51  ;;  %2135 = vrcp.f32 %v1691_v26  ;;  %vm1774_vm15 = vweird.f32 %v2134_v55  ;;  %v1794_v49 = vand.u32 2147483648, %v1691_v26 }
 0x48e   : > { %v1756_v23 = vmul.f32 %v2128_v6, %v1755_v60  ;;  %2137 = vrcp.f32 %v1692_v12  ;;  %vm1775_vm12 = vmor %vm1773_vm6, %vm1774_vm15  ;;  %v1792_v52 = vand.u32 2147483647, %v1691_v26  ;;  %v1809_v56 = vand.u32 2147483648, %v1692_v12 }
 0x48f   : > { %v1770_v4 = vsub.f32 1.0, %v1769_v61  ;;  %v1807_v58 = vand.u32 2147483647, %v1692_v12  ;;  %vm1788_vm10 = vweird.f32 %v1691_v26  ;;  %v1795_v63 = vor.u32 1.1754944e-38, %v1794_v49 }
 0x490   : > { %v1757_v1 = vadd.f32 %v2128_v6, %v1756_v23  ;;  %vm1803_vm2 = vweird.f32 %v1692_v12  ;;  %vm1793_vm5 = vcmp.eq.f32.partialorder %v1792_v52, 8.507059e+37  ;;  %v1810_v2 = vor.u32 1.1754944e-38, %v1809_v56 }
 0x491   : > { %v1771_v33 = vmul.f32 %v2134_v55, %v1770_v4  ;;  %vm1808_vm14 = vcmp.eq.f32.partialorder %v1807_v58, 8.507059e+37 }
 0x492   : > { %v1761_v27 = vsel %vm1760_vm11, %v2128_v6, %v1757_v1 }
 0x493   : > { %v1766_v37 = vsel %vm1763_vm13, %v1765_v9, %v1761_v27  ;;  %v2136_v39 = vpop.eup %2135  ;;  %v1772_v41 = vadd.f32 %v2134_v55, %v1771_v33 }
 0x494   : > { %1817 = vst [vmem:[%s3089_s30 + $0x20] sm:$0xff] %v1766_v37  ;;  %v2138_v45 = vpop.eup %2137  ;;  %v1784_v0 = vmul.f32 %v2136_v39, %v1691_v26  ;;  %vm1789_vm4 = vweird.f32 %v2136_v39 }
 0x495   : > { %v1776_v43 = vsel %vm1775_vm12, %v2134_v55, %v1772_v41  ;;  %v1799_v18 = vmul.f32 %v2138_v45, %v1692_v12  ;;  %vm1804_vm0 = vweird.f32 %v2138_v45  ;;  %vm1790_vm1 = vmor %vm1788_vm10, %vm1789_vm4 }
 0x496   : > { %v1781_v47 = vsel %vm1778_vm3, %v1780_v46, %v1776_v43  ;;  %v1785_v25 = vsub.f32 1.0, %v1784_v0  ;;  %vm1805_vm7 = vmor %vm1803_vm2, %vm1804_vm0 }
 0x497   : > { %1818 = vst [vmem:[%s3089_s30 + $0x28] sm:$0xff] %v1781_v47  ;;  %v1800_v11 = vsub.f32 1.0, %v1799_v18 }
 0x498   : > { %v1786_v50 = vmul.f32 %v2136_v39, %v1785_v25 }
 0x499   : > { %v1801_v24 = vmul.f32 %v2138_v45, %v1800_v11 }
 0x49a   : > { %v1787_v17 = vadd.f32 %v2136_v39, %v1786_v50 }
 0x49b   : > { %v1802_v3 = vadd.f32 %v2138_v45, %v1801_v24 }
 0x49c   : > { %v1791_v20 = vsel %vm1790_vm1, %v2136_v39, %v1787_v17 }
 0x49d   : > { %v1796_v31 = vsel %vm1793_vm5, %v1795_v63, %v1791_v20  ;;  %v1806_v8 = vsel %vm1805_vm7, %v2138_v45, %v1802_v3 }
 0x49e   : > { %1819 = vst [vmem:[%s3089_s30 + $0x30] sm:$0xff] %v1796_v31  ;;  %v1811_v10 = vsel %vm1808_vm14, %v1810_v2, %v1806_v8 }
 0x49f   : > { %1820 = vst [vmem:[%s3089_s30 + $0x38] sm:$0xff] %v1811_v10 }
 0x4a0   : > { %2174 = shalt.err (!%p2171_p3)
}
 0x4a1   : > { %s2212_s20 = smov 256   ;;  %s2213_s30 = smov 16  }
 0x4a2   : > { %2011 = dma.vmem_to_hbm [thread:$0]  (%p2322_p5), %s1835_s29, 1024, %s1837_s23, %s1822_s17, %s2212_s20, %s2212_s20, %s2213_s30  }
 0x4a3 PF: > { %p2017_p4 = scmp.ge.s32.totalorder %s2209_s28, 2  ;;  %s1851_s22 = sand.u32 1, %s2197_s25  }
 0x4a4   : > { %s1852_s3 = scalar_lea.sflag [#allocation3], %s1851_s22 }
 0x4a5   : > { %p2014_p7 = pnand %p2017_p4, %p2326_p6 }
 0x4a7   : > { %p2015_p8 = pneg %p2014_p7 }
 0x4a9   : > { %2192 = dma.done.wait (%p2015_p8), %s1852_s3, 1024  }
 0x4aa   : > { %2194 = vsyncadd (%p2015_p8), %s1852_s3, 4294966272  ;;  %s3213_s24 = sld [smem:[#allocation5_spill]]  ;;  %p23_p9 = scmp.ge.s32.totalorder %s2309_s14, 4  }
 0x4ab   : > { %s3214_s25 = smov %s2201_s26  ;;  %s3215_s26 = smov %s2205_s27 }
 0x4ac   : > { %s3217_s28 = smov %s2309_s14  ;;  %25 = sbr.rel (!%p23_p9) target bundleno = 7 (0x7), region = 113 }
 0x4b0   : > { %s3216_s27 = smov %s3213_s24 }
 0x4b1   :  { %1858 = vsyncpa [#allocation3], 1 }
 0x4b2   :  { %1860 = vsyncpa [#allocation3 + $0x1], 1 }

</bundles_post_ra>
